<compile_context>
chip_gen: v5e
topology: v5e:2x2
jax: 0.10.0
libtpu: 0.0.40
codegen_flags: <defaults>
</compile_context>

<pallas_src>
import functools

import jax
import jax.numpy as jnp
from jax.experimental import pallas as pl
from jax.experimental.pallas import tpu as pltpu

EPS = 1e-5


def _round_up(v, m):
    return (v + m - 1) // m * m


def _vmem_limit_bytes():
    """~3/4 of physical VMEM, capped at 96 MiB (v5e/v6e -> 96 MiB, v7x -> 48 MiB)."""
    cap = 128 * 1024 * 1024
    try:
        cap = int(pltpu.get_tpu_info().vmem_capacity_bytes)
    except Exception:
        pass
    return min(cap * 3 // 4, 96 * 1024 * 1024)


# ---------------------------------------------------------------------------
# Pallas kernels (all tiled over M rows, grid = (Mpad // TM,), "parallel")
# ---------------------------------------------------------------------------
def _write_partial_stats(st_ref, y):
    """st_ref is a (2, Cpad) per-tile block: row0 = sum, row1 = sum of squares.

    `y` is the f32 MXU accumulator, so statistics are unaffected by the bf16
    down-cast of the stored activations.
    """
    st_ref[0:1, :] = jnp.sum(y, axis=0, keepdims=True)
    st_ref[1:2, :] = jnp.sum(y * y, axis=0, keepdims=True)


def _stage1_proj_kernel(p_ref, w_ref, ba_ref, y1_ref, res_ref, st_ref, *, cpad):
    """conv1 and conv1a fused into ONE GEMM: patches @ [W1 | W1a]."""
    ycat = jnp.dot(p_ref[...], w_ref[...],
                   preferred_element_type=jnp.float32)          # (TM, 2*cpad) f32
    y1 = ycat[:, :cpad]                                          # conv1 (bias dropped)
    y1_ref[...] = y1.astype(y1_ref.dtype)                        # bf16 store
    res_ref[...] = (ycat[:, cpad:] + ba_ref[...]).astype(res_ref.dtype)  # conv1a (+bias)
    _write_partial_stats(st_ref, y1)                             # BN1 partials (f32)


def _stage1_id_kernel(p_ref, w_ref, y1_ref, st_ref):
    """conv1 only (identity residual handled separately)."""
    y1 = jnp.dot(p_ref[...], w_ref[...], preferred_element_type=jnp.float32)
    y1_ref[...] = y1.astype(y1_ref.dtype)
    _write_partial_stats(st_ref, y1)


def _stage2_kernel(y1_ref, sc_ref, sh_ref, w2_ref, y2_ref, st_ref,
                   *, tm, m_real, need_mask):
    """BN1 apply (scale/shift) + ReLU + 1x1 conv GEMM + BN2 partial stats."""
    h = jnp.maximum(y1_ref[...].astype(jnp.float32) * sc_ref[...] + sh_ref[...], 0.0)
    if need_mask:
        # zero the M-padding rows so they do not pollute the BN2 statistics
        row = pl.program_id(0) * tm + jax.lax.broadcasted_iota(jnp.int32, h.shape, 0)
        h = jnp.where(row < m_real, h, 0.0)
    y2 = jnp.dot(h.astype(jnp.bfloat16), w2_ref[...],
                 preferred_element_type=jnp.float32)             # conv2 (bias dropped)
    y2_ref[...] = y2.astype(y2_ref.dtype)                        # bf16 store
    _write_partial_stats(st_ref, y2)                             # BN2 partials (f32)


def _stage3_kernel(y2_ref, sc_ref, sh_ref, res_ref, o_ref):
    """BN2 apply + ReLU + residual add."""
    y = jnp.maximum(y2_ref[...].astype(jnp.float32) * sc_ref[...] + sh_ref[...], 0.0)
    o_ref[...] = (y + res_ref[...].astype(jnp.float32)).astype(o_ref.dtype)


# ---------------------------------------------------------------------------
# Glue: im2col, BN stat folding, parameter setup, wrapper
# ---------------------------------------------------------------------------
def _im2col(x_nhwc, k, stride, pad):
    """Extract k x k patches -> (N*Ho*Wo, k*k*C), tap-major / channel-minor."""
    if pad > 0:
        x_nhwc = jnp.pad(x_nhwc, ((0, 0), (pad, pad), (pad, pad), (0, 0)))
    N, H, W, C = x_nhwc.shape
    Ho = (H - k) // stride + 1
    Wo = (W - k) // stride + 1
    cols = []
    for di in range(k):
        for dj in range(k):
            cols.append(
                x_nhwc[:, di:di + stride * Ho:stride, dj:dj + stride * Wo:stride, :])
    patches = jnp.stack(cols, axis=3)                  # (N, Ho, Wo, k*k, C)
    return patches.reshape(N * Ho * Wo, k * k * C), Ho, Wo


def _bn_scale_shift(stats, gamma, beta, m_real):
    """Fold per-tile (sum, sumsq) partials into per-channel scale/shift (f32)."""
    # TODO(synk): E[x^2]-mean^2 can cancel for very large M with large |mean|;
    # a shifted/Welford fold would be more robust if that regime matters.
    total = jnp.sum(stats[:, 0, :], axis=0)
    total_sq = jnp.sum(stats[:, 1, :], axis=0)
    mean = total / m_real
    var = jnp.maximum(total_sq / m_real - mean * mean, 0.0)   # biased variance
    scale = gamma * jax.lax.rsqrt(var + EPS)
    shift = beta - mean * scale
    return scale.reshape(1, -1), shift.reshape(1, -1)


def init_params(key, cin, cout, k=3):
    """Deterministic init mirroring PyTorch Conv2d / BatchNorm2d defaults."""
    ks = jax.random.split(key, 6)
    bound1 = 1.0 / float(cin * k * k) ** 0.5
    bound2 = 1.0 / float(cout) ** 0.5
    params = {
        "w1": jax.random.uniform(ks[0], (k, k, cin, cout), jnp.float32, -bound1, bound1),
        "b1": jax.random.uniform(ks[1], (cout,), jnp.float32, -bound1, bound1),
        "w2": jax.random.uniform(ks[2], (cout, cout), jnp.float32, -bound2, bound2),
        "b2": jax.random.uniform(ks[3], (cout,), jnp.float32, -bound2, bound2),
        "g1": jnp.ones((cout,), jnp.float32),
        "be1": jnp.zeros((cout,), jnp.float32),
        "g2": jnp.ones((cout,), jnp.float32),
        "be2": jnp.zeros((cout,), jnp.float32),
    }
    if cin != cout:
        params["wa"] = jax.random.uniform(ks[4], (k, k, cin, cout), jnp.float32,
                                          -bound1, bound1)
        params["ba"] = jax.random.uniform(ks[5], (cout,), jnp.float32, -bound1, bound1)
    return params


@functools.partial(jax.jit, static_argnames=("stride", "pd", "tm", "layout"))
def residual_block_forward(x, params, stride=1, pd=0, tm=512, layout="NCHW"):
    """Forward of residual_block.

    layout="NCHW": x is (N, Cin, H, W), output (N, Cout, Ho, Wo)  (PyTorch contract)
    layout="NHWC": x is (N, H, W, Cin), output (N, Ho, Wo, Cout)  (skips transposes)
    """
    cin = params["w1"].shape[2]
    cout = params["w1"].shape[3]
    has_proj = "wa" in params

    if layout == "NCHW":
        x_nhwc = jnp.transpose(x, (0, 2, 3, 1))
    elif layout == "NHWC":
        x_nhwc = x
    else:
        raise ValueError(f"unsupported layout {layout!r}")
    x_bf = x_nhwc.astype(jnp.bfloat16)
    N, H, W = x_nhwc.shape[0], x_nhwc.shape[1], x_nhwc.shape[2]

    # im2col in bf16 so the 9x patch matrix is already half-width in HBM.
    patches, Ho, Wo = _im2col(x_bf, 3, stride, pd)
    M = N * Ho * Wo
    K = 9 * cin

    # Row tile: big (amortize per-step overhead), but capped so the "parallel"
    # grid has >= 2 steps whenever M allows it (v7x megacore sharding).
    TM = _round_up(max(int(tm), 128), 128)
    if M > 128:
        TM = min(TM, _round_up(-(-M // 2), 128))
    Mpad = _round_up(M, TM)
    Kpad = _round_up(K, 16)                  # bf16 sublane packing of the weights
    Cpad = _round_up(cout, 128)              # lane-dense stores / full MXU N dim
    G = Mpad // TM

    patches = jnp.pad(patches, ((0, Mpad - M), (0, Kpad - K)))

    def pad_w(w):   # (K, cout) -> (Kpad, Cpad)
        return jnp.pad(w, ((0, Kpad - K), (0, Cpad - cout)))

    def pad_c(v):   # (cout,) -> (Cpad,)
        return jnp.pad(v, (0, Cpad - cout))

    # NOTE: conv1/conv2 biases (b1, b2) are intentionally NOT used: the batch
    # mean subtraction inside training-mode BN cancels them exactly.
    w1p = pad_w(params["w1"].reshape(K, cout)).astype(jnp.bfloat16)
    w2p = jnp.pad(params["w2"],
                  ((0, Cpad - cout), (0, Cpad - cout))).astype(jnp.bfloat16)
    g1, be1 = pad_c(params["g1"]), pad_c(params["be1"])
    g2, be2 = pad_c(params["g2"]), pad_c(params["be2"])

    row_patch = pl.BlockSpec((TM, Kpad), lambda i: (i, 0))
    row_act = pl.BlockSpec((TM, Cpad), lambda i: (i, 0))
    vec_spec = pl.BlockSpec((1, Cpad), lambda i: (0, 0))
    st_spec = pl.BlockSpec((None, 2, Cpad), lambda i: (i, 0, 0))
    cparams = pltpu.CompilerParams(dimension_semantics=("parallel",),
                                   vmem_limit_bytes=_vmem_limit_bytes())

    act_shape = jax.ShapeDtypeStruct((Mpad, Cpad), jnp.bfloat16)   # y1 / res / y2
    out_shape = jax.ShapeDtypeStruct((Mpad, Cpad), jnp.float32)
    st_shape = jax.ShapeDtypeStruct((G, 2, Cpad), jnp.float32)

    # -------- stage 1: conv1 (+ fused projection conv1a) + BN1 partial stats
    if has_proj:
        wa_p = pad_w(params["wa"].reshape(K, cout)).astype(jnp.bfloat16)
        w1cat = jnp.concatenate([w1p, wa_p], axis=1)           # (Kpad, 2*Cpad)
        ba = pad_c(params["ba"]).reshape(1, Cpad)
        y1, res, st1 = pl.pallas_call(
            functools.partial(_stage1_proj_kernel, cpad=Cpad),
            grid=(G,),
            in_specs=[row_patch,
                      pl.BlockSpec((Kpad, 2 * Cpad), lambda i: (0, 0)),
                      vec_spec],
            out_specs=(row_act, row_act, st_spec),
            out_shape=(act_shape, act_shape, st_shape),
            compiler_params=cparams,
        )(patches, w1cat, ba)
    else:
        # identity residual: requires Ho == H, Wo == W (as in the PyTorch module)
        assert (Ho, Wo) == (H, W), "identity residual needs matching spatial dims"
        res = jnp.pad(x_bf.reshape(M, cout),
                      ((0, Mpad - M), (0, Cpad - cout)))
        y1, st1 = pl.pallas_call(
            _stage1_id_kernel,
            grid=(G,),
            in_specs=[row_patch, pl.BlockSpec((Kpad, Cpad), lambda i: (0, 0))],
            out_specs=(row_act, st_spec),
            out_shape=(act_shape, st_shape),
            compiler_params=cparams,
        )(patches, w1p)

    scale1, shift1 = _bn_scale_shift(st1, g1, be1, M)

    # -------- stage 2: BN1 apply + ReLU + 1x1 conv GEMM + BN2 partial stats
    y2, st2 = pl.pallas_call(
        functools.partial(_stage2_kernel, tm=TM, m_real=M, need_mask=(Mpad != M)),
        grid=(G,),
        in_specs=[row_act, vec_spec, vec_spec,
                  pl.BlockSpec((Cpad, Cpad), lambda i: (0, 0))],
        out_specs=(row_act, st_spec),
        out_shape=(act_shape, st_shape),
        compiler_params=cparams,
    )(y1, scale1, shift1, w2p)

    scale2, shift2 = _bn_scale_shift(st2, g2, be2, M)

    # -------- stage 3: BN2 apply + ReLU + residual add (f32 output)
    out2d = pl.pallas_call(
        _stage3_kernel,
        grid=(G,),
        in_specs=[row_act, vec_spec, vec_spec, row_act],
        out_specs=pl.BlockSpec((TM, Cpad), lambda i: (i, 0)),
        out_shape=out_shape,
        compiler_params=cparams,
    )(y2, scale2, shift2, res)

    # slice + reshape (+ optional transpose) fuse into a single XLA copy pass
    out = out2d[:M, :cout].reshape(N, Ho, Wo, cout)
    if layout == "NCHW":
        out = jnp.transpose(out, (0, 3, 1, 2))
    return out


# ---------------------------------------------------------------------------
# Pure-JAX f32 reference (correctness check only)
# ---------------------------------------------------------------------------
def _bn_ref(y, gamma, beta):
    mean = jnp.mean(y, axis=(0, 1, 2), keepdims=True)
    var = jnp.mean((y - mean) ** 2, axis=(0, 1, 2), keepdims=True)
    return (y - mean) * jax.lax.rsqrt(var + EPS) * gamma + beta


def reference_forward(x_nchw, params, stride=1, pd=0):
    cout = params["w1"].shape[-1]
    x = jnp.transpose(x_nchw, (0, 2, 3, 1)).astype(jnp.float32)  # NHWC
    dn = ("NHWC", "HWIO", "NHWC")

    def conv(z, w, b, s, p):
        y = jax.lax.conv_general_dilated(z, w, (s, s), [(p, p), (p, p)],
                                         dimension_numbers=dn,
                                         precision=jax.lax.Precision.HIGHEST)
        return y + b.reshape(1, 1, 1, -1)

    y = conv(x, params["w1"], params["b1"], stride, pd)
    y = _bn_ref(y, params["g1"].reshape(1, 1, 1, -1), params["be1"].reshape(1, 1, 1, -1))
    y = jnp.maximum(y, 0.0)
    y = conv(y, params["w2"].reshape(1, 1, cout, cout), params["b2"], 1, 0)
    y = _bn_ref(y, params["g2"].reshape(1, 1, 1, -1), params["be2"].reshape(1, 1, 1, -1))
    y = jnp.maximum(y, 0.0)
    if "wa" in params:
        res = conv(x, params["wa"], params["ba"], stride, pd)
    else:
        res = x
    return jnp.transpose(y + res, (0, 3, 1, 2))


def _check(out, ref, name):
    # Kernel feeds the MXU in bfloat16 (f32 accumulation) and stores the
    # inter-stage activations in bf16, so compare against the pure-f32
    # reference with bf16-appropriate tolerances plus a mean-error bound.
    diff = jnp.abs(out - ref)
    max_diff = float(jnp.max(diff))
    mean_diff = float(jnp.mean(diff))
    ok = bool(jnp.allclose(out, ref, atol=6e-2, rtol=6e-2)) and mean_diff < 2.5e-2
    assert ok, f"{name} mismatch: max_abs={max_diff:.4e} mean_abs={mean_diff:.4e}"


# ---------------------------------------------------------------------------
if __name__ == "__main__":
    key = jax.random.PRNGKey(0)
    kx, kp1, kp2 = jax.random.split(key, 3)

    x = jax.random.normal(kx, (2, 4, 16, 16), jnp.float32)

    # Case 1: in_channels != out_channels -> conv1a projection residual (stride=1, pd=0)
    params_proj = init_params(kp1, cin=4, cout=8)
    out1 = jax.block_until_ready(
        residual_block_forward(x, params_proj, stride=1, pd=0))
    ref1 = reference_forward(x, params_proj, stride=1, pd=0)
    assert out1.shape == (2, 8, 14, 14), out1.shape
    _check(out1, ref1, "proj path")

    # Case 2: in_channels == out_channels -> identity residual (stride=1, pd=1)
    params_id = init_params(kp2, cin=4, cout=4)
    out2 = jax.block_until_ready(
        residual_block_forward(x, params_id, stride=1, pd=1))
    ref2 = reference_forward(x, params_id, stride=1, pd=1)
    assert out2.shape == (2, 4, 16, 16), out2.shape
    _check(out2, ref2, "identity path")

    print("KERNEL_OK")
</pallas_src>

<mosaic_0001>
module attributes {stable_mosaic.version = 11 : i64} {
  func.func @_stage1_proj_kernel(%arg0: i32, %arg1: memref<256x48xbf16, #tpu.memory_space<vmem>>, %arg2: memref<48x256xbf16, #tpu.memory_space<vmem>>, %arg3: memref<1x128xf32, #tpu.memory_space<vmem>>, %arg4: memref<256x128xbf16, #tpu.memory_space<vmem>>, %arg5: memref<256x128xbf16, #tpu.memory_space<vmem>>, %arg6: memref<1x2x128xf32, #tpu.memory_space<vmem>>) attributes {dimension_semantics = [#tpu.dimension_semantics<parallel>], iteration_bounds = array<i64: 2>, scalar_prefetch = 0 : i64, scratch_operands = 0 : i64, tpu.core_type = #tpu.core_type<tc>, window_params = [{transform_indices = @transform_0, window_bounds = array<i64: 256, 48>}, {pipeline_mode = #tpu.pipeline_mode<synchronous>, transform_indices = @transform_1, window_bounds = array<i64: 48, 256>}, {pipeline_mode = #tpu.pipeline_mode<synchronous>, transform_indices = @transform_2, window_bounds = array<i64: 1, 128>}, {transform_indices = @transform_3, window_bounds = array<i64: 256, 128>}, {transform_indices = @transform_4, window_bounds = array<i64: 256, 128>}, {transform_indices = @transform_5, window_bounds = array<i64: 1, 2, 128>}]} {
    %c0 = arith.constant 0 : index
    %c0_0 = arith.constant 0 : index
    %0 = vector.load %arg1[%c0, %c0_0] : memref<256x48xbf16, #tpu.memory_space<vmem>>, vector<256x48xbf16>
    %c0_1 = arith.constant 0 : index
    %c0_2 = arith.constant 0 : index
    %1 = vector.load %arg2[%c0_1, %c0_2] : memref<48x256xbf16, #tpu.memory_space<vmem>>, vector<48x256xbf16>
    %cst = arith.constant dense<0.000000e+00> : vector<256x256xf32>
    %2 = tpu.matmul %0, %1, %cst {dimension_numbers = #tpu.dot_dimension_numbers<[1], [0], [0], [1], [0, 0, 1, 1], [], []>} : vector<256x48xbf16>, vector<48x256xbf16>, vector<256x256xf32> -> vector<256x256xf32>
    %3 = vector.extract_strided_slice %2 {offsets = [0, 0], sizes = [256, 128], strides = [1, 1]} : vector<256x256xf32> to vector<256x128xf32>
    %4 = arith.truncf %3 : vector<256x128xf32> to vector<256x128xbf16>
    %c0_3 = arith.constant 0 : index
    %c0_4 = arith.constant 0 : index
    %5 = vector.load %arg4[%c0_3, %c0_4] : memref<256x128xbf16, #tpu.memory_space<vmem>>, vector<256x128xbf16>
    tpu.vector_store %arg4[%c0_3, %c0_4], %4 {strides = array<i32>} : memref<256x128xbf16, #tpu.memory_space<vmem>>, vector<256x128xbf16>,
    %6 = vector.extract_strided_slice %2 {offsets = [0, 128], sizes = [256, 128], strides = [1, 1]} : vector<256x256xf32> to vector<256x128xf32>
    %c0_5 = arith.constant 0 : index
    %c0_6 = arith.constant 0 : index
    %7 = vector.load %arg3[%c0_5, %c0_6] : memref<1x128xf32, #tpu.memory_space<vmem>>, vector<1x128xf32>
    %8 = vector.broadcast %7 : vector<1x128xf32> to vector<256x128xf32>
    %9 = arith.addf %6, %8 : vector<256x128xf32>
    %10 = arith.truncf %9 : vector<256x128xf32> to vector<256x128xbf16>
    %c0_7 = arith.constant 0 : index
    %c0_8 = arith.constant 0 : index
    %11 = vector.load %arg5[%c0_7, %c0_8] : memref<256x128xbf16, #tpu.memory_space<vmem>>, vector<256x128xbf16>
    tpu.vector_store %arg5[%c0_7, %c0_8], %10 {strides = array<i32>} : memref<256x128xbf16, #tpu.memory_space<vmem>>, vector<256x128xbf16>,
    %cst_9 = arith.constant dense<0.000000e+00> : vector<128xf32>
    %12 = vector.multi_reduction <add>, %3, %cst_9 [0] : vector<256x128xf32> to vector<128xf32>
    %13 = vector.shape_cast %12 : vector<128xf32> to vector<1x128xf32>
    %c0_10 = arith.constant 0 : index
    %c0_11 = arith.constant 0 : index
    %c0_12 = arith.constant 0 : index
    %14 = vector.load %arg6[%c0_10, %c0_11, %c0_12] : memref<1x2x128xf32, #tpu.memory_space<vmem>>, vector<1x1x128xf32>
    %15 = vector.shape_cast %14 : vector<1x1x128xf32> to vector<1x128xf32>
    %16 = vector.shape_cast %13 : vector<1x128xf32> to vector<1x1x128xf32>
    tpu.vector_store %arg6[%c0_10, %c0_11, %c0_12], %16 {strides = array<i32>} : memref<1x2x128xf32, #tpu.memory_space<vmem>>, vector<1x1x128xf32>,
    %17 = arith.mulf %3, %3 : vector<256x128xf32>
    %cst_13 = arith.constant dense<0.000000e+00> : vector<128xf32>
    %18 = vector.multi_reduction <add>, %17, %cst_13 [0] : vector<256x128xf32> to vector<128xf32>
    %19 = vector.shape_cast %18 : vector<128xf32> to vector<1x128xf32>
    %c0_14 = arith.constant 0 : index
    %c1 = arith.constant 1 : index
    %c0_15 = arith.constant 0 : index
    %20 = vector.load %arg6[%c0_14, %c1, %c0_15] : memref<1x2x128xf32, #tpu.memory_space<vmem>>, vector<1x1x128xf32>
    %21 = vector.shape_cast %20 : vector<1x1x128xf32> to vector<1x128xf32>
    %22 = vector.shape_cast %19 : vector<1x128xf32> to vector<1x1x128xf32>
    tpu.vector_store %arg6[%c0_14, %c1, %c0_15], %22 {strides = array<i32>} : memref<1x2x128xf32, #tpu.memory_space<vmem>>, vector<1x1x128xf32>,
    return
  }
  func.func @transform_0(%arg0: i32) -> (i32, i32) {
    %c0_i32 = arith.constant 0 : i32
    %c0_i32_0 = arith.constant 0 : i32
    return %arg0, %c0_i32 : i32, i32
  }
  func.func @transform_1(%arg0: i32) -> (i32, i32) {
    %c0_i32 = arith.constant 0 : i32
    %c0_i32_0 = arith.constant 0 : i32
    %c0_i32_1 = arith.constant 0 : i32
    return %c0_i32, %c0_i32_0 : i32, i32
  }
  func.func @transform_2(%arg0: i32) -> (i32, i32) {
    %c0_i32 = arith.constant 0 : i32
    %c0_i32_0 = arith.constant 0 : i32
    %c0_i32_1 = arith.constant 0 : i32
    return %c0_i32, %c0_i32_0 : i32, i32
  }
  func.func @transform_3(%arg0: i32) -> (i32, i32) {
    %c0_i32 = arith.constant 0 : i32
    %c0_i32_0 = arith.constant 0 : i32
    return %arg0, %c0_i32 : i32, i32
  }
  func.func @transform_4(%arg0: i32) -> (i32, i32) {
    %c0_i32 = arith.constant 0 : i32
    %c0_i32_0 = arith.constant 0 : i32
    return %arg0, %c0_i32 : i32, i32
  }
  func.func @transform_5(%arg0: i32) -> (i32, i32, i32) {
    %c0_i32 = arith.constant 0 : i32
    %c0_i32_0 = arith.constant 0 : i32
    %c0_i32_1 = arith.constant 0 : i32
    return %arg0, %c0_i32, %c0_i32_0 : i32, i32, i32
  }
}

module attributes {stable_mosaic.version = 11 : i64} {
  func.func @_stage3_kernel(%arg0: i32, %arg1: memref<256x128xbf16, #tpu.memory_space<vmem>>, %arg2: memref<1x128xf32, #tpu.memory_space<vmem>>, %arg3: memref<1x128xf32, #tpu.memory_space<vmem>>, %arg4: memref<256x128xbf16, #tpu.memory_space<vmem>>, %arg5: memref<256x128xf32, #tpu.memory_space<vmem>>) attributes {dimension_semantics = [#tpu.dimension_semantics<parallel>], iteration_bounds = array<i64: 2>, scalar_prefetch = 0 : i64, scratch_operands = 0 : i64, tpu.core_type = #tpu.core_type<tc>, window_params = [{transform_indices = @transform_0, window_bounds = array<i64: 256, 128>}, {pipeline_mode = #tpu.pipeline_mode<synchronous>, transform_indices = @transform_1, window_bounds = array<i64: 1, 128>}, {pipeline_mode = #tpu.pipeline_mode<synchronous>, transform_indices = @transform_2, window_bounds = array<i64: 1, 128>}, {transform_indices = @transform_3, window_bounds = array<i64: 256, 128>}, {transform_indices = @transform_4, window_bounds = array<i64: 256, 128>}]} {
    %c0 = arith.constant 0 : index
    %c0_0 = arith.constant 0 : index
    %0 = vector.load %arg1[%c0, %c0_0] : memref<256x128xbf16, #tpu.memory_space<vmem>>, vector<256x128xbf16>
    %1 = arith.extf %0 : vector<256x128xbf16> to vector<256x128xf32>
    %c0_1 = arith.constant 0 : index
    %c0_2 = arith.constant 0 : index
    %2 = vector.load %arg2[%c0_1, %c0_2] : memref<1x128xf32, #tpu.memory_space<vmem>>, vector<1x128xf32>
    %3 = vector.broadcast %2 : vector<1x128xf32> to vector<256x128xf32>
    %4 = arith.mulf %1, %3 : vector<256x128xf32>
    %c0_3 = arith.constant 0 : index
    %c0_4 = arith.constant 0 : index
    %5 = vector.load %arg3[%c0_3, %c0_4] : memref<1x128xf32, #tpu.memory_space<vmem>>, vector<1x128xf32>
    %6 = vector.broadcast %5 : vector<1x128xf32> to vector<256x128xf32>
    %7 = arith.addf %4, %6 : vector<256x128xf32>
    %cst = arith.constant 0.000000e+00 : f32
    %8 = vector.broadcast %cst : f32 to vector<256x128xf32>
    %9 = arith.maximumf %7, %8 : vector<256x128xf32>
    %c0_5 = arith.constant 0 : index
    %c0_6 = arith.constant 0 : index
    %10 = vector.load %arg4[%c0_5, %c0_6] : memref<256x128xbf16, #tpu.memory_space<vmem>>, vector<256x128xbf16>
    %11 = arith.extf %10 : vector<256x128xbf16> to vector<256x128xf32>
    %12 = arith.addf %9, %11 : vector<256x128xf32>
    %c0_7 = arith.constant 0 : index
    %c0_8 = arith.constant 0 : index
    %13 = vector.load %arg5[%c0_7, %c0_8] : memref<256x128xf32, #tpu.memory_space<vmem>>, vector<256x128xf32>
    tpu.vector_store %arg5[%c0_7, %c0_8], %12 {strides = array<i32>} : memref<256x128xf32, #tpu.memory_space<vmem>>, vector<256x128xf32>,
    return
  }
  func.func @transform_0(%arg0: i32) -> (i32, i32) {
    %c0_i32 = arith.constant 0 : i32
    %c0_i32_0 = arith.constant 0 : i32
    return %arg0, %c0_i32 : i32, i32
  }
  func.func @transform_1(%arg0: i32) -> (i32, i32) {
    %c0_i32 = arith.constant 0 : i32
    %c0_i32_0 = arith.constant 0 : i32
    %c0_i32_1 = arith.constant 0 : i32
    return %c0_i32, %c0_i32_0 : i32, i32
  }
  func.func @transform_2(%arg0: i32) -> (i32, i32) {
    %c0_i32 = arith.constant 0 : i32
    %c0_i32_0 = arith.constant 0 : i32
    %c0_i32_1 = arith.constant 0 : i32
    return %c0_i32, %c0_i32_0 : i32, i32
  }
  func.func @transform_3(%arg0: i32) -> (i32, i32) {
    %c0_i32 = arith.constant 0 : i32
    %c0_i32_0 = arith.constant 0 : i32
    return %arg0, %c0_i32 : i32, i32
  }
  func.func @transform_4(%arg0: i32) -> (i32, i32) {
    %c0_i32 = arith.constant 0 : i32
    %c0_i32_0 = arith.constant 0 : i32
    return %arg0, %c0_i32 : i32, i32
  }
}

module attributes {stable_mosaic.version = 11 : i64} {
  func.func @_stage2_kernel(%arg0: i32, %arg1: memref<256x128xbf16, #tpu.memory_space<vmem>>, %arg2: memref<1x128xf32, #tpu.memory_space<vmem>>, %arg3: memref<1x128xf32, #tpu.memory_space<vmem>>, %arg4: memref<128x128xbf16, #tpu.memory_space<vmem>>, %arg5: memref<256x128xbf16, #tpu.memory_space<vmem>>, %arg6: memref<1x2x128xf32, #tpu.memory_space<vmem>>) attributes {dimension_semantics = [#tpu.dimension_semantics<parallel>], iteration_bounds = array<i64: 2>, scalar_prefetch = 0 : i64, scratch_operands = 0 : i64, tpu.core_type = #tpu.core_type<tc>, window_params = [{transform_indices = @transform_0, window_bounds = array<i64: 256, 128>}, {pipeline_mode = #tpu.pipeline_mode<synchronous>, transform_indices = @transform_1, window_bounds = array<i64: 1, 128>}, {pipeline_mode = #tpu.pipeline_mode<synchronous>, transform_indices = @transform_2, window_bounds = array<i64: 1, 128>}, {pipeline_mode = #tpu.pipeline_mode<synchronous>, transform_indices = @transform_3, window_bounds = array<i64: 128, 128>}, {transform_indices = @transform_4, window_bounds = array<i64: 256, 128>}, {transform_indices = @transform_5, window_bounds = array<i64: 1, 2, 128>}]} {
    %c0 = arith.constant 0 : index
    %c0_0 = arith.constant 0 : index
    %0 = vector.load %arg1[%c0, %c0_0] : memref<256x128xbf16, #tpu.memory_space<vmem>>, vector<256x128xbf16>
    %1 = arith.extf %0 : vector<256x128xbf16> to vector<256x128xf32>
    %c0_1 = arith.constant 0 : index
    %c0_2 = arith.constant 0 : index
    %2 = vector.load %arg2[%c0_1, %c0_2] : memref<1x128xf32, #tpu.memory_space<vmem>>, vector<1x128xf32>
    %3 = vector.broadcast %2 : vector<1x128xf32> to vector<256x128xf32>
    %4 = arith.mulf %1, %3 : vector<256x128xf32>
    %c0_3 = arith.constant 0 : index
    %c0_4 = arith.constant 0 : index
    %5 = vector.load %arg3[%c0_3, %c0_4] : memref<1x128xf32, #tpu.memory_space<vmem>>, vector<1x128xf32>
    %6 = vector.broadcast %5 : vector<1x128xf32> to vector<256x128xf32>
    %7 = arith.addf %4, %6 : vector<256x128xf32>
    %cst = arith.constant 0.000000e+00 : f32
    %8 = vector.broadcast %cst : f32 to vector<256x128xf32>
    %9 = arith.maximumf %7, %8 : vector<256x128xf32>
    %c256_i32 = arith.constant 256 : i32
    %10 = arith.muli %arg0, %c256_i32 : i32
    %11 = tpu.iota {dimensions = array<i32: 0>} : vector<256x128xi32>
    %12 = vector.broadcast %10 : i32 to vector<256x128xi32>
    %13 = arith.addi %12, %11 : vector<256x128xi32>
    %c392_i32 = arith.constant 392 : i32
    %14 = vector.broadcast %c392_i32 : i32 to vector<256x128xi32>
    %15 = arith.cmpi slt, %13, %14 : vector<256x128xi32>
    %cst_5 = arith.constant 0.000000e+00 : f32
    %16 = vector.broadcast %cst_5 : f32 to vector<256x128xf32>
    %17 = arith.select %15, %9, %16 : vector<256x128xi1>, vector<256x128xf32>
    %18 = arith.truncf %17 : vector<256x128xf32> to vector<256x128xbf16>
    %c0_6 = arith.constant 0 : index
    %c0_7 = arith.constant 0 : index
    %19 = vector.load %arg4[%c0_6, %c0_7] : memref<128x128xbf16, #tpu.memory_space<vmem>>, vector<128x128xbf16>
    %cst_8 = arith.constant dense<0.000000e+00> : vector<256x128xf32>
    %20 = tpu.matmul %18, %19, %cst_8 {dimension_numbers = #tpu.dot_dimension_numbers<[1], [0], [0], [1], [0, 0, 1, 1], [], []>} : vector<256x128xbf16>, vector<128x128xbf16>, vector<256x128xf32> -> vector<256x128xf32>
    %21 = arith.truncf %20 : vector<256x128xf32> to vector<256x128xbf16>
    %c0_9 = arith.constant 0 : index
    %c0_10 = arith.constant 0 : index
    %22 = vector.load %arg5[%c0_9, %c0_10] : memref<256x128xbf16, #tpu.memory_space<vmem>>, vector<256x128xbf16>
    tpu.vector_store %arg5[%c0_9, %c0_10], %21 {strides = array<i32>} : memref<256x128xbf16, #tpu.memory_space<vmem>>, vector<256x128xbf16>,
    %cst_11 = arith.constant dense<0.000000e+00> : vector<128xf32>
    %23 = vector.multi_reduction <add>, %20, %cst_11 [0] : vector<256x128xf32> to vector<128xf32>
    %24 = vector.shape_cast %23 : vector<128xf32> to vector<1x128xf32>
    %c0_12 = arith.constant 0 : index
    %c0_13 = arith.constant 0 : index
    %c0_14 = arith.constant 0 : index
    %25 = vector.load %arg6[%c0_12, %c0_13, %c0_14] : memref<1x2x128xf32, #tpu.memory_space<vmem>>, vector<1x1x128xf32>
    %26 = vector.shape_cast %25 : vector<1x1x128xf32> to vector<1x128xf32>
    %27 = vector.shape_cast %24 : vector<1x128xf32> to vector<1x1x128xf32>
    tpu.vector_store %arg6[%c0_12, %c0_13, %c0_14], %27 {strides = array<i32>} : memref<1x2x128xf32, #tpu.memory_space<vmem>>, vector<1x1x128xf32>,
    %28 = arith.mulf %20, %20 : vector<256x128xf32>
    %cst_15 = arith.constant dense<0.000000e+00> : vector<128xf32>
    %29 = vector.multi_reduction <add>, %28, %cst_15 [0] : vector<256x128xf32> to vector<128xf32>
    %30 = vector.shape_cast %29 : vector<128xf32> to vector<1x128xf32>
    %c0_16 = arith.constant 0 : index
    %c1 = arith.constant 1 : index
    %c0_17 = arith.constant 0 : index
    %31 = vector.load %arg6[%c0_16, %c1, %c0_17] : memref<1x2x128xf32, #tpu.memory_space<vmem>>, vector<1x1x128xf32>
    %32 = vector.shape_cast %31 : vector<1x1x128xf32> to vector<1x128xf32>
    %33 = vector.shape_cast %30 : vector<1x128xf32> to vector<1x1x128xf32>
    tpu.vector_store %arg6[%c0_16, %c1, %c0_17], %33 {strides = array<i32>} : memref<1x2x128xf32, #tpu.memory_space<vmem>>, vector<1x1x128xf32>,
    return
  }
  func.func @transform_0(%arg0: i32) -> (i32, i32) {
    %c0_i32 = arith.constant 0 : i32
    %c0_i32_0 = arith.constant 0 : i32
    return %arg0, %c0_i32 : i32, i32
  }
  func.func @transform_1(%arg0: i32) -> (i32, i32) {
    %c0_i32 = arith.constant 0 : i32
    %c0_i32_0 = arith.constant 0 : i32
    %c0_i32_1 = arith.constant 0 : i32
    return %c0_i32, %c0_i32_0 : i32, i32
  }
  func.func @transform_2(%arg0: i32) -> (i32, i32) {
    %c0_i32 = arith.constant 0 : i32
    %c0_i32_0 = arith.constant 0 : i32
    %c0_i32_1 = arith.constant 0 : i32
    return %c0_i32, %c0_i32_0 : i32, i32
  }
  func.func @transform_3(%arg0: i32) -> (i32, i32) {
    %c0_i32 = arith.constant 0 : i32
    %c0_i32_0 = arith.constant 0 : i32
    %c0_i32_1 = arith.constant 0 : i32
    return %c0_i32, %c0_i32_0 : i32, i32
  }
  func.func @transform_4(%arg0: i32) -> (i32, i32) {
    %c0_i32 = arith.constant 0 : i32
    %c0_i32_0 = arith.constant 0 : i32
    return %arg0, %c0_i32 : i32, i32
  }
  func.func @transform_5(%arg0: i32) -> (i32, i32, i32) {
    %c0_i32 = arith.constant 0 : i32
    %c0_i32_0 = arith.constant 0 : i32
    %c0_i32_1 = arith.constant 0 : i32
    return %arg0, %c0_i32, %c0_i32_0 : i32, i32, i32
  }
}

</mosaic_0001>

<bundles_post_ra>
// kernel: residual_block_forward.5
= control target key start
LH: loop header
LB: loop body
LE: loop exit
PB: predicated region body
PF: predicated region fallthrough
CT: control target
= control target key end

     0   :  { %s801_s15 = smov 0   ;;  %s973_s0 = inlined_call_operand.vmem [shape: bf16[512,128], index: 0, kind: input, shape index: {}]   ;;  %s974_s1 = inlined_call_operand.vmem [shape: f32[1,128], index: 1, kind: input, shape index: {}]   ;;  %s975_s2 = inlined_call_operand.vmem [shape: f32[1,128], index: 2, kind: input, shape index: {}]   ;;  %s976_s3 = inlined_call_operand.vmem [shape: bf16[512,128], index: 3, kind: input, shape index: {}]   ;;  %s977_s4 = inlined_call_operand.vmem [shape: f32[512,128], index: 4, kind: output, shape index: {}]  }
   0x1 LB: > { %s587_s16 = sadd.s32 4294967295, %s774_s15   ;;  %p591_p0 = scmp.ge.s32.totalorder %s774_s15, 1  ;;  %s774_s15 = sphi %s801_s15, %s14_s15  }
   0x2   : > { %p174_p1 = scmp.lt.s32.totalorder %s774_s15, 3 }
   0x4   : > { %p175_p2 = pnand %p591_p0, %p174_p1 }
   0x5   : > { %s592_s17 = sshll.u32 (!%p175_p2), %s587_s16, 5 }
   0x6   : > { %178 = sbr.rel (%p175_p2) target bundleno = 69 (0x45), region = 36  ;;  %p206_p3 = scmp.lt.s32.totalorder (!%p175_p2), %s592_s17, 63 }
   0xb   : > { %s979_s17 = smov (!%p206_p3, %s592_s17), 63  ;;  %v825_v0 = vld [vmem:[%s974_s1] ss:$0 sm:$0xff] }
   0xc   : > { %s593_s18 = sshll.u32 %s979_s17, 2  ;;  %v830_v1 = vld [vmem:[%s975_s2] ss:$0 sm:$0xff]  ;;  %s597_s29 = sshll.u32 %s979_s17, 3 }
   0xd   : > { %s815_s21 = scalar_lea.vmem %s973_s0, %s593_s18  ;;  %s820_s24 = scalar_lea.vmem %s976_s3, %s593_s18 }
   0xe   : > { %v601_v2 = vld [vmem:[%s815_s21] sm:$0xff]   ;;  %v728_v4 = vld [vmem:[%s815_s21 + $0x8] sm:$0xff]   ;;  %v729_v10 = vld [vmem:[%s815_s21 + $0x10] sm:$0xff]   ;;  %s859_s6 = scalar_lea.vmem %s977_s4, %s597_s29 }
   0xf   : > { %v665_v3 = vld [vmem:[%s820_s24] sm:$0xff]   ;;  %v602_v5 = vunpack.c.l.bf16 %v601_v2  ;;  %v603_v7 = vunpack.c.h.bf16 %v601_v2  ;;  %v743_v9 = vld [vmem:[%s820_s24 + $0x8] sm:$0xff]   ;;  %v744_v11 = vld [vmem:[%s820_s24 + $0x10] sm:$0xff]   ;;  %v606_v12 = vunpack.c.l.bf16 %v728_v4  ;;  %v607_v14 = vunpack.c.h.bf16 %v728_v4 }
  0x10   : > { %v666_v6 = vunpack.c.l.bf16 %v665_v3  ;;  %v667_v8 = vunpack.c.h.bf16 %v665_v3  ;;  %v670_v13 = vunpack.c.l.bf16 %v743_v9  ;;  %v671_v15 = vunpack.c.h.bf16 %v743_v9  ;;  %v730_v16 = vld [vmem:[%s815_s21 + $0x18] sm:$0xff]   ;;  %v731_v42 = vld [vmem:[%s815_s21 + $0x20] sm:$0xff]   ;;  %v732_v52 = vld [vmem:[%s815_s21 + $0x28] sm:$0xff]  }
  0x11   : > { %v291_v17 = vmul.f32 %v825_v0, %v602_v5  ;;  %v292_v18 = vmul.f32 %v825_v0, %v603_v7  ;;  %v610_v19 = vunpack.c.l.bf16 %v729_v10  ;;  %v674_v20 = vunpack.c.l.bf16 %v744_v11  ;;  %v842_v21 = vld [vmem:[%s820_s24 + $0x18] sm:$0xff]   ;;  %v746_v51 = vld [vmem:[%s820_s24 + $0x20] sm:$0xff]   ;;  %v747_v60 = vld [vmem:[%s820_s24 + $0x28] sm:$0xff]  }
  0x12   : > { %v293_v22 = vmul.f32 %v825_v0, %v606_v12  ;;  %v294_v23 = vmul.f32 %v825_v0, %v607_v14  ;;  %v611_v24 = vunpack.c.h.bf16 %v729_v10  ;;  %v675_v25 = vunpack.c.h.bf16 %v744_v11  ;;  %v733_v61 = vld [vmem:[%s815_s21 + $0x30] sm:$0xff]  }
  0x13   : > { %v327_v26 = vadd.f32 %v830_v1, %v291_v17  ;;  %v328_v27 = vadd.f32 %v830_v1, %v292_v18  ;;  %v295_v28 = vmul.f32 %v825_v0, %v610_v19  ;;  %v614_v29 = vunpack.c.l.bf16 %v730_v16  ;;  %v748_v12 = vld [vmem:[%s820_s24 + $0x30] sm:$0xff]  }
  0x14   : > { %v329_v30 = vadd.f32 %v830_v1, %v293_v22  ;;  %v330_v31 = vadd.f32 %v830_v1, %v294_v23  ;;  %v296_v32 = vmul.f32 %v825_v0, %v611_v24  ;;  %v678_v33 = vunpack.c.l.bf16 %v842_v21 }
  0x15   : > { %v359_v34 = vmax.f32 %v327_v26, 0.0  ;;  %v360_v35 = vmax.f32 %v328_v27, 0.0  ;;  %v331_v36 = vadd.f32 %v830_v1, %v295_v28  ;;  %v297_v37 = vmul.f32 %v825_v0, %v614_v29 }
  0x16   : > { %v361_v38 = vmax.f32 %v329_v30, 0.0  ;;  %v362_v39 = vmax.f32 %v330_v31, 0.0  ;;  %v332_v40 = vadd.f32 %v830_v1, %v296_v32  ;;  %v615_v41 = vunpack.c.h.bf16 %v730_v16  ;;  %v749_v30 = vld [vmem:[%s820_s24 + $0x38] sm:$0xff]   ;;  %v735_v31 = vld [vmem:[%s815_s21 + $0x40] sm:$0xff]  }
  0x17   : > { %v455_v43 = vadd.f32 %v666_v6, %v359_v34  ;;  %v456_v44 = vadd.f32 %v667_v8, %v360_v35  ;;  %v363_v45 = vmax.f32 %v331_v36, 0.0  ;;  %v333_v46 = vadd.f32 %v830_v1, %v297_v37 }
  0x18   : > { %v457_v47 = vadd.f32 %v670_v13, %v361_v38  ;;  %v458_v48 = vadd.f32 %v671_v15, %v362_v39  ;;  %v364_v49 = vmax.f32 %v332_v40, 0.0  ;;  %v298_v50 = vmul.f32 %v825_v0, %v615_v41  ;;  %v734_v13 = vld [vmem:[%s815_s21 + $0x38] sm:$0xff]   ;;  %v750_v40 = vld [vmem:[%s820_s24 + $0x40] sm:$0xff]  }
  0x19   : > { %487 = vst [vmem:[%s859_s6] sm:$0xff] %v455_v43  ;;  %v459_v53 = vadd.f32 %v674_v20, %v363_v45  ;;  %v365_v54 = vmax.f32 %v333_v46, 0.0  ;;  %v618_v55 = vunpack.c.l.bf16 %v731_v42  ;;  %v679_v58 = vunpack.c.h.bf16 %v842_v21  ;;  %v736_v45 = vld [vmem:[%s815_s21 + $0x48] sm:$0xff]  }
  0x1a   : > { %488 = vst [vmem:[%s859_s6 + $0x8] sm:$0xff] %v456_v44  ;;  %v460_v56 = vadd.f32 %v675_v25, %v364_v49  ;;  %v334_v57 = vadd.f32 %v830_v1, %v298_v50  ;;  %v619_v59 = vunpack.c.h.bf16 %v731_v42  ;;  %v682_v2 = vunpack.c.l.bf16 %v746_v51 }
  0x1b   : > { %489 = vst [vmem:[%s859_s6 + $0x10] sm:$0xff] %v457_v47  ;;  %v461_v62 = vadd.f32 %v678_v33, %v365_v54  ;;  %v299_v63 = vmul.f32 %v825_v0, %v618_v55  ;;  %v622_v3 = vunpack.c.l.bf16 %v732_v52  ;;  %v683_v6 = vunpack.c.h.bf16 %v746_v51  ;;  %v751_v54 = vld [vmem:[%s820_s24 + $0x48] sm:$0xff]   ;;  %v737_v55 = vld [vmem:[%s815_s21 + $0x50] sm:$0xff]  }
  0x1c   : > { %490 = vst [vmem:[%s859_s6 + $0x18] sm:$0xff] %v458_v48  ;;  %v366_v4 = vmax.f32 %v334_v57, 0.0  ;;  %v300_v5 = vmul.f32 %v825_v0, %v619_v59  ;;  %v623_v7 = vunpack.c.h.bf16 %v732_v52  ;;  %v686_v10 = vunpack.c.l.bf16 %v747_v60 }
  0x1d   : > { %491 = vst [vmem:[%s859_s6 + $0x20] sm:$0xff] %v459_v53  ;;  %v335_v8 = vadd.f32 %v830_v1, %v299_v63  ;;  %v301_v9 = vmul.f32 %v825_v0, %v622_v3  ;;  %v626_v11 = vunpack.c.l.bf16 %v733_v61  ;;  %v687_v17 = vunpack.c.h.bf16 %v747_v60 }
  0x1e   : > { %492 = vst [vmem:[%s859_s6 + $0x28] sm:$0xff] %v460_v56  ;;  %v462_v14 = vadd.f32 %v679_v58, %v366_v4  ;;  %v336_v15 = vadd.f32 %v830_v1, %v300_v5  ;;  %v302_v16 = vmul.f32 %v825_v0, %v623_v7  ;;  %v627_v21 = vunpack.c.h.bf16 %v733_v61 }
  0x1f   : > { %493 = vst [vmem:[%s859_s6 + $0x30] sm:$0xff] %v461_v62  ;;  %v367_v18 = vmax.f32 %v335_v8, 0.0  ;;  %v337_v19 = vadd.f32 %v830_v1, %v301_v9  ;;  %v303_v20 = vmul.f32 %v825_v0, %v626_v11  ;;  %v690_v24 = vunpack.c.l.bf16 %v748_v12  ;;  %v738_v11 = vld [vmem:[%s815_s21 + $0x58] sm:$0xff]  }
  0x20   : > { %494 = vst [vmem:[%s859_s6 + $0x38] sm:$0xff] %v462_v14  ;;  %v368_v22 = vmax.f32 %v336_v15, 0.0  ;;  %v338_v23 = vadd.f32 %v830_v1, %v302_v16  ;;  %v630_v25 = vunpack.c.l.bf16 %v734_v13  ;;  %v304_v29 = vmul.f32 %v825_v0, %v627_v21 }
  0x21   : > { %v463_v26 = vadd.f32 %v682_v2, %v367_v18  ;;  %v369_v27 = vmax.f32 %v337_v19, 0.0  ;;  %v339_v28 = vadd.f32 %v830_v1, %v303_v20  ;;  %v691_v34 = vunpack.c.h.bf16 %v748_v12 }
  0x22   : > { %v464_v32 = vadd.f32 %v683_v6, %v368_v22  ;;  %v370_v33 = vmax.f32 %v338_v23, 0.0  ;;  %v305_v35 = vmul.f32 %v825_v0, %v630_v25  ;;  %v340_v38 = vadd.f32 %v830_v1, %v304_v29  ;;  %v752_v6 = vld [vmem:[%s820_s24 + $0x50] sm:$0xff]   ;;  %v739_v25 = vld [vmem:[%s815_s21 + $0x60] sm:$0xff]  }
  0x23   : > { %495 = vst [vmem:[%s859_s6 + $0x40] sm:$0xff] %v463_v26  ;;  %v465_v36 = vadd.f32 %v686_v10, %v369_v27  ;;  %v371_v37 = vmax.f32 %v339_v28, 0.0  ;;  %v631_v39 = vunpack.c.h.bf16 %v734_v13  ;;  %v694_v43 = vunpack.c.l.bf16 %v749_v30 }
  0x24   : > { %496 = vst [vmem:[%s859_s6 + $0x48] sm:$0xff] %v464_v32  ;;  %v466_v41 = vadd.f32 %v687_v17, %v370_v33  ;;  %v341_v42 = vadd.f32 %v830_v1, %v305_v35  ;;  %v634_v44 = vunpack.c.l.bf16 %v735_v31  ;;  %v372_v47 = vmax.f32 %v340_v38, 0.0 }
  0x25   : > { %497 = vst [vmem:[%s859_s6 + $0x50] sm:$0xff] %v465_v36  ;;  %v467_v46 = vadd.f32 %v690_v24, %v371_v37  ;;  %v306_v48 = vmul.f32 %v825_v0, %v631_v39  ;;  %v695_v49 = vunpack.c.h.bf16 %v749_v30  ;;  %v698_v52 = vunpack.c.l.bf16 %v750_v40  ;;  %v753_v24 = vld [vmem:[%s820_s24 + $0x58] sm:$0xff]   ;;  %v740_v39 = vld [vmem:[%s815_s21 + $0x68] sm:$0xff]  }
  0x26   : > { %498 = vst [vmem:[%s859_s6 + $0x58] sm:$0xff] %v466_v41  ;;  %v373_v50 = vmax.f32 %v341_v42, 0.0  ;;  %v307_v51 = vmul.f32 %v825_v0, %v634_v44  ;;  %v635_v53 = vunpack.c.h.bf16 %v735_v31  ;;  %v468_v56 = vadd.f32 %v691_v34, %v372_v47  ;;  %v754_v34 = vld [vmem:[%s820_s24 + $0x60] sm:$0xff]  }
  0x27   : > { %499 = vst [vmem:[%s859_s6 + $0x60] sm:$0xff] %v467_v46  ;;  %v342_v57 = vadd.f32 %v830_v1, %v306_v48  ;;  %v699_v58 = vunpack.c.h.bf16 %v750_v40  ;;  %v638_v59 = vunpack.c.l.bf16 %v736_v45  ;;  %v639_v63 = vunpack.c.h.bf16 %v736_v45  ;;  %v755_v48 = vld [vmem:[%s820_s24 + $0x68] sm:$0xff]  }
  0x28   : > { %v469_v60 = vadd.f32 %v694_v43, %v373_v50  ;;  %v343_v61 = vadd.f32 %v830_v1, %v307_v51  ;;  %v308_v62 = vmul.f32 %v825_v0, %v635_v53  ;;  %500 = vst [vmem:[%s859_s6 + $0x68] sm:$0xff] %v468_v56  ;;  %v702_v4 = vunpack.c.l.bf16 %v751_v54 }
  0x29   : > { %v374_v2 = vmax.f32 %v342_v57, 0.0  ;;  %v309_v3 = vmul.f32 %v825_v0, %v638_v59  ;;  %v642_v5 = vunpack.c.l.bf16 %v737_v55  ;;  %v310_v9 = vmul.f32 %v825_v0, %v639_v63 }
  0x2a   : > { %501 = vst [vmem:[%s859_s6 + $0x70] sm:$0xff] %v469_v60  ;;  %v375_v7 = vmax.f32 %v343_v61, 0.0  ;;  %v344_v8 = vadd.f32 %v830_v1, %v308_v62  ;;  %v703_v10 = vunpack.c.h.bf16 %v751_v54  ;;  %v643_v15 = vunpack.c.h.bf16 %v737_v55  ;;  %v756_v62 = vld [vmem:[%s820_s24 + $0x70] sm:$0xff]  }
  0x2b   : > { %v470_v12 = vadd.f32 %v695_v49, %v374_v2  ;;  %v345_v13 = vadd.f32 %v830_v1, %v309_v3  ;;  %v311_v14 = vmul.f32 %v825_v0, %v642_v5  ;;  %v346_v18 = vadd.f32 %v830_v1, %v310_v9  ;;  %v741_v49 = vld [vmem:[%s815_s21 + $0x70] sm:$0xff]   ;;  %v742_v5 = vld [vmem:[%s815_s21 + $0x78] sm:$0xff]  }
  0x2c   : > { %v471_v16 = vadd.f32 %v698_v52, %v375_v7  ;;  %v376_v17 = vmax.f32 %v344_v8, 0.0  ;;  %v706_v19 = vunpack.c.l.bf16 %v752_v6  ;;  %v312_v22 = vmul.f32 %v825_v0, %v643_v15 }
  0x2d   : > { %502 = vst [vmem:[%s859_s6 + $0x78] sm:$0xff] %v470_v12  ;;  %v377_v20 = vmax.f32 %v345_v13, 0.0  ;;  %v347_v21 = vadd.f32 %v830_v1, %v311_v14  ;;  %v646_v23 = vunpack.c.l.bf16 %v738_v11  ;;  %v378_v27 = vmax.f32 %v346_v18, 0.0 }
  0x2e   : > { %503 = vst [vmem:[%s859_s6 + $0x80] sm:$0xff] %v471_v16  ;;  %v472_v26 = vadd.f32 %v699_v58, %v376_v17  ;;  %v707_v28 = vunpack.c.h.bf16 %v752_v6  ;;  %v647_v29 = vunpack.c.h.bf16 %v738_v11  ;;  %v348_v32 = vadd.f32 %v830_v1, %v312_v22 }
  0x2f   : > { %v473_v30 = vadd.f32 %v702_v4, %v377_v20  ;;  %v379_v31 = vmax.f32 %v347_v21, 0.0  ;;  %v313_v33 = vmul.f32 %v825_v0, %v646_v23  ;;  %v474_v35 = vadd.f32 %v703_v10, %v378_v27  ;;  %v757_v21 = vld [vmem:[%s820_s24 + $0x78] sm:$0xff]  }
  0x30   : > { %504 = vst [vmem:[%s859_s6 + $0x88] sm:$0xff] %v472_v26  ;;  %v710_v36 = vunpack.c.l.bf16 %v753_v24  ;;  %v314_v37 = vmul.f32 %v825_v0, %v647_v29  ;;  %v650_v38 = vunpack.c.l.bf16 %v739_v25  ;;  %v380_v41 = vmax.f32 %v348_v32, 0.0 }
  0x31   : > { %505 = vst [vmem:[%s859_s6 + $0x90] sm:$0xff] %v473_v30  ;;  %v475_v40 = vadd.f32 %v706_v19, %v379_v31  ;;  %v349_v42 = vadd.f32 %v830_v1, %v313_v33  ;;  %v711_v43 = vunpack.c.h.bf16 %v753_v24  ;;  %v714_v46 = vunpack.c.l.bf16 %v754_v34 }
  0x32   : > { %506 = vst [vmem:[%s859_s6 + $0x98] sm:$0xff] %v474_v35  ;;  %v350_v44 = vadd.f32 %v830_v1, %v314_v37  ;;  %v315_v45 = vmul.f32 %v825_v0, %v650_v38  ;;  %v651_v47 = vunpack.c.h.bf16 %v739_v25  ;;  %v476_v50 = vadd.f32 %v707_v28, %v380_v41 }
  0x33   : > { %507 = vst [vmem:[%s859_s6 + $0xa0] sm:$0xff] %v475_v40  ;;  %v381_v51 = vmax.f32 %v349_v42, 0.0  ;;  %v715_v52 = vunpack.c.h.bf16 %v754_v34  ;;  %v654_v53 = vunpack.c.l.bf16 %v740_v39  ;;  %v655_v57 = vunpack.c.h.bf16 %v740_v39 }
  0x34   : > { %v382_v54 = vmax.f32 %v350_v44, 0.0  ;;  %v351_v55 = vadd.f32 %v830_v1, %v315_v45  ;;  %v316_v56 = vmul.f32 %v825_v0, %v651_v47  ;;  %508 = vst [vmem:[%s859_s6 + $0xa8] sm:$0xff] %v476_v50  ;;  %v718_v60 = vunpack.c.l.bf16 %v755_v48 }
  0x35   : > { %v477_v58 = vadd.f32 %v710_v36, %v381_v51  ;;  %v317_v59 = vmul.f32 %v825_v0, %v654_v53  ;;  %v658_v61 = vunpack.c.l.bf16 %v741_v49  ;;  %v318_v4 = vmul.f32 %v825_v0, %v655_v57 }
  0x36   : > { %v478_v63 = vadd.f32 %v711_v43, %v382_v54  ;;  %v383_v2 = vmax.f32 %v351_v55, 0.0  ;;  %v352_v3 = vadd.f32 %v830_v1, %v316_v56  ;;  %v719_v7 = vunpack.c.h.bf16 %v755_v48 }
  0x37   : > { %509 = vst [vmem:[%s859_s6 + $0xb0] sm:$0xff] %v477_v58  ;;  %v353_v6 = vadd.f32 %v830_v1, %v317_v59  ;;  %v319_v8 = vmul.f32 %v825_v0, %v658_v61  ;;  %v659_v9 = vunpack.c.h.bf16 %v741_v49  ;;  %v354_v12 = vadd.f32 %v830_v1, %v318_v4 }
  0x38   : > { %510 = vst [vmem:[%s859_s6 + $0xb8] sm:$0xff] %v478_v63  ;;  %v479_v10 = vadd.f32 %v714_v46, %v383_v2  ;;  %v384_v11 = vmax.f32 %v352_v3, 0.0  ;;  %v722_v13 = vunpack.c.l.bf16 %v756_v62  ;;  %v662_v17 = vunpack.c.l.bf16 %v742_v5 }
  0x39   : > { %v385_v14 = vmax.f32 %v353_v6, 0.0  ;;  %v355_v15 = vadd.f32 %v830_v1, %v319_v8  ;;  %v320_v16 = vmul.f32 %v825_v0, %v659_v9  ;;  %v386_v19 = vmax.f32 %v354_v12, 0.0 }
  0x3a   : > { %511 = vst [vmem:[%s859_s6 + $0xc0] sm:$0xff] %v479_v10  ;;  %v480_v18 = vadd.f32 %v715_v52, %v384_v11  ;;  %v723_v20 = vunpack.c.h.bf16 %v756_v62  ;;  %v663_v22 = vunpack.c.h.bf16 %v742_v5  ;;  %v321_v26 = vmul.f32 %v825_v0, %v662_v17 }
  0x3b   : > { %v481_v23 = vadd.f32 %v718_v60, %v385_v14  ;;  %v387_v24 = vmax.f32 %v355_v15, 0.0  ;;  %v356_v25 = vadd.f32 %v830_v1, %v320_v16  ;;  %v482_v27 = vadd.f32 %v719_v7, %v386_v19 }
  0x3c   : > { %512 = vst [vmem:[%s859_s6 + $0xc8] sm:$0xff] %v480_v18  ;;  %v322_v28 = vmul.f32 %v825_v0, %v663_v22  ;;  %v357_v31 = vadd.f32 %v830_v1, %v321_v26  ;;  %v726_v32 = vunpack.c.l.bf16 %v757_v21  ;;  %v727_v34 = vunpack.c.h.bf16 %v757_v21 }
  0x3d   : > { %513 = vst [vmem:[%s859_s6 + $0xd0] sm:$0xff] %v481_v23  ;;  %v483_v29 = vadd.f32 %v722_v13, %v387_v24  ;;  %v388_v30 = vmax.f32 %v356_v25, 0.0 }
  0x3e   : > { %514 = vst [vmem:[%s859_s6 + $0xd8] sm:$0xff] %v482_v27  ;;  %v358_v33 = vadd.f32 %v830_v1, %v322_v28  ;;  %v389_v36 = vmax.f32 %v357_v31, 0.0 }
  0x3f   : > { %515 = vst [vmem:[%s859_s6 + $0xe0] sm:$0xff] %v483_v29  ;;  %v484_v35 = vadd.f32 %v723_v20, %v388_v30 }
  0x40   : > { %v390_v37 = vmax.f32 %v358_v33, 0.0  ;;  %v485_v38 = vadd.f32 %v726_v32, %v389_v36 }
  0x41   : > { %516 = vst [vmem:[%s859_s6 + $0xe8] sm:$0xff] %v484_v35 }
  0x42   : > { %v486_v39 = vadd.f32 %v727_v34, %v390_v37  ;;  %517 = vst [vmem:[%s859_s6 + $0xf0] sm:$0xff] %v485_v38 }
  0x44   : > { %518 = vst [vmem:[%s859_s6 + $0xf8] sm:$0xff] %v486_v39 }
  0x45 PF: > { %s14_s15 = sadd.s32 1, %s774_s15  }
  0x46   : > { %p11_p4 = scmp.ge.s32.totalorder %s14_s15, 4  }
  0x48   :  { %13 = sbr.rel (!%p11_p4) target bundleno = 1 (0x1), region = 69 }

// kernel: residual_block_forward.3
= control target key start
LH: loop header
LB: loop body
LE: loop exit
PB: predicated region body
PF: predicated region fallthrough
CT: control target
= control target key end

     0   :  { %s1420_s18 = smov 0   ;;  %s1726_s0 = inlined_call_operand.vmem [shape: bf16[512,48], index: 0, kind: input, shape index: {}]   ;;  %s1727_s1 = inlined_call_operand.vmem [shape: bf16[48,256], index: 1, kind: input, shape index: {}]   ;;  %s1728_s2 = inlined_call_operand.vmem [shape: f32[1,128], index: 2, kind: input, shape index: {}]   ;;  %s1729_s3 = inlined_call_operand.vmem [shape: bf16[512,128], index: 3, kind: output, shape index: {0}]   ;;  %s1730_s4 = inlined_call_operand.vmem [shape: bf16[512,128], index: 4, kind: output, shape index: {1}]   ;;  %s1731_s5 = inlined_call_operand.vmem [shape: f32[2,2,128], index: 5, kind: output, shape index: {2}]  }
   0x1 LB: > { %s1426_s19 = sadd.s32 4294967295, %s1388_s18   ;;  %p1025_p0 = scmp.ge.s32.totalorder %s1388_s18, 1  ;;  %s1388_s18 = sphi %s1420_s18, %s16_s18  }
   0x2   : > { %p193_p1 = scmp.lt.s32.totalorder %s1388_s18, 3 }
   0x4   : > { %p194_p2 = pnand %p1025_p0, %p193_p1 }
   0x5   : > { %s1026_s28 = sshll.u32 (!%p194_p2), %s1426_s19, 5  ;;  %p248_p4 = scmp.lt.s32.totalorder (!%p194_p2), %s1426_s19, 1 }
   0x6   : > { %197 = sbr.rel (%p194_p2) target bundleno = 320 (0x140), region = 32  ;;  %p231_p3 = scmp.lt.s32.totalorder (!%p194_p2), %s1026_s28, 63 }
   0xb   : > { %v1115_v0 = vld [vmem:[%s1727_s1 + $0x20] sm:$0xf]  ;;  %v1176_v1 = vld [vmem:[%s1727_s1 + $0x24] sm:$0xf0]  ;;  %v1107_v2 = vld [vmem:[%s1727_s1 + $0x10] sm:$0xf] }
   0xc   : > { %v1116_v3 = vor.u32 %v1176_v1, %v1115_v0  ;;  %v1174_v4 = vld [vmem:[%s1727_s1 + $0x14] sm:$0xf0]  ;;  %v1175_v5 = vld [vmem:[%s1727_s1 + $0x24] sm:$0xf]  ;;  %v1117_v6 = vld [vmem:[%s1727_s1 + $0x28] sm:$0xf0] }
   0xd   : > { %v1108_v7 = vor.u32 %v1174_v4, %v1107_v2  ;;  %v1120_v8 = vor.u32 %v1175_v5, %v1117_v6  ;;  %v1173_v9 = vld [vmem:[%s1727_s1 + $0x14] sm:$0xf]  ;;  %v1109_v10 = vld [vmem:[%s1727_s1 + $0x18] sm:$0xf0]  ;;  %v1099_v11 = vld [vmem:[%s1727_s1] sm:$0xf] }
   0xe   : > { %455 = vmatpush.bf16.msra.mxu0 %v1116_v3  ;;  %1367 = vmatpush.bf16.msra.mxu2 %v1116_v3  ;;  %v1172_v12 = vld [vmem:[%s1727_s1 + $0x4] sm:$0xf0]  ;;  %s1733_s28 = smov (!%p231_p3, %s1026_s28), 63  ;;  %v1112_v13 = vor.u32 %v1173_v9, %v1109_v10  ;;  %v1171_v14 = vld [vmem:[%s1727_s1 + $0x4] sm:$0xf]  ;;  %vm401_vm0 = vcmask 392192  }
   0xf   : > { %1370 = vmatpush.bf16.msra.mxu3 %v1120_v8  ;;  %544 = vmatpush.bf16.msra.mxu1 %v1120_v8  ;;  %v1101_v15 = vld [vmem:[%s1727_s1 + $0x8] sm:$0xf0]  ;;  %v1100_v16 = vor.u32 %v1172_v12, %v1099_v11  ;;  %s1467_s22 = sshll.u32 %s1733_s28, 2  ;;  %v1528_v37 = vld [vmem:[%s1728_s2] ss:$0 sm:$0xff]  ;;  %s1735_s19 = smov (!%p248_p4, %s1426_s19), 1 }
  0x10   : > { %s1473_s25 = scalar_lea.vmem %s1726_s0, %s1467_s22  ;;  %v1104_v17 = vor.u32 %v1171_v14, %v1101_v15  ;;  %s1534_s30 = scalar_lea.vmem %s1729_s3, %s1467_s22 }
  0x11   : > { %v1155_v18 = vld [vmem:[%s1473_s25] sm:$0xff]  ;;  %v1156_v20 = vld [vmem:[%s1473_s25 + $0x8] sm:$0xff]  ;;  %v1157_v22 = vld [vmem:[%s1473_s25 + $0x10] sm:$0xff]  ;;  %s1543_s8 = scalar_lea.vmem %s1730_s4, %s1467_s22  ;;  %s1032_s9 = sshll.u32 %s1735_s19, 1 }
  0x12   : > { %456 = vmatpush.bf16.msra.mxu0 %v1108_v7  ;;  %1368 = vmatpush.bf16.msra.mxu2 %v1108_v7  ;;  %v1163_v19 = vld [vmem:[%s1473_s25 + $0x40] sm:$0xff]  ;;  %v1164_v21 = vld [vmem:[%s1473_s25 + $0x48] sm:$0xff]  ;;  %v1165_v23 = vld [vmem:[%s1473_s25 + $0x50] sm:$0xff]  ;;  %s251_s12 = scalar_lea.vmem %s1731_s5, %s1032_s9 }
  0x13   : > { %1371 = vmatpush.bf16.msra.mxu3 %v1112_v13  ;;  %545 = vmatpush.bf16.msra.mxu1 %v1112_v13  ;;  %v1158_v24 = vld [vmem:[%s1473_s25 + $0x18] sm:$0xff]  ;;  %v1159_v26 = vld [vmem:[%s1473_s25 + $0x20] sm:$0xff]  ;;  %v1160_v28 = vld [vmem:[%s1473_s25 + $0x28] sm:$0xff] }
  0x14   : > { %v1166_v25 = vld [vmem:[%s1473_s25 + $0x58] sm:$0xff]  ;;  %v1167_v27 = vld [vmem:[%s1473_s25 + $0x60] sm:$0xff]  ;;  %v1168_v29 = vld [vmem:[%s1473_s25 + $0x68] sm:$0xff] }
  0x15   : > { %v1161_v30 = vld [vmem:[%s1473_s25 + $0x30] sm:$0xff]  ;;  %v1162_v32 = vld [vmem:[%s1473_s25 + $0x38] sm:$0xff] }
  0x16   : > { %457 = vmatpush.bf16.msra.mxu0 %v1100_v16  ;;  %1369 = vmatpush.bf16.msra.mxu2 %v1100_v16  ;;  %v1169_v31 = vld [vmem:[%s1473_s25 + $0x70] sm:$0xff]  ;;  %v1170_v33 = vld [vmem:[%s1473_s25 + $0x78] sm:$0xff] }
  0x17   : > { %1372 = vmatpush.bf16.msra.mxu3 %v1104_v17  ;;  %546 = vmatpush.bf16.msra.mxu1 %v1104_v17 }
  0x19   : > { %1121 = vmatmul.msk.bf16.vlgmr.msra.gmra.mxu0 %vm401_vm0, %v1155_v18  ;;  %1129 = vmatmul.msk.bf16.vlgmr.msra.gmra.mxu2 %vm401_vm0, %v1163_v19 }
  0x1a   : > { %1145 = vmatmul.msk.bf16.vlgmr.msra.gmra.mxu3 %vm401_vm0, %v1163_v19  ;;  %1137 = vmatmul.msk.bf16.vlgmr.msra.gmra.mxu1 %vm401_vm0, %v1155_v18 }
  0x29   : > { %1122 = vmatmul.msk.bf16.gmra.mxu0 %vm401_vm0, %v1156_v20  ;;  %1130 = vmatmul.msk.bf16.gmra.mxu2 %vm401_vm0, %v1164_v21 }
  0x2a   : > { %1146 = vmatmul.msk.bf16.gmra.mxu3 %vm401_vm0, %v1164_v21  ;;  %1138 = vmatmul.msk.bf16.gmra.mxu1 %vm401_vm0, %v1156_v20 }
  0x39   : > { %1123 = vmatmul.msk.bf16.gmra.mxu0 %vm401_vm0, %v1157_v22  ;;  %1131 = vmatmul.msk.bf16.gmra.mxu2 %vm401_vm0, %v1165_v23 }
  0x3a   : > { %1147 = vmatmul.msk.bf16.gmra.mxu3 %vm401_vm0, %v1165_v23  ;;  %1139 = vmatmul.msk.bf16.gmra.mxu1 %vm401_vm0, %v1157_v22 }
  0x49   : > { %1124 = vmatmul.msk.bf16.gmra.mxu0 %vm401_vm0, %v1158_v24  ;;  %1132 = vmatmul.msk.bf16.gmra.mxu2 %vm401_vm0, %v1166_v25 }
  0x4a   : > { %1148 = vmatmul.msk.bf16.gmra.mxu3 %vm401_vm0, %v1166_v25  ;;  %1140 = vmatmul.msk.bf16.gmra.mxu1 %vm401_vm0, %v1158_v24 }
  0x59   : > { %1125 = vmatmul.msk.bf16.gmra.mxu0 %vm401_vm0, %v1159_v26  ;;  %1133 = vmatmul.msk.bf16.gmra.mxu2 %vm401_vm0, %v1167_v27 }
  0x5a   : > { %1149 = vmatmul.msk.bf16.gmra.mxu3 %vm401_vm0, %v1167_v27  ;;  %1141 = vmatmul.msk.bf16.gmra.mxu1 %vm401_vm0, %v1159_v26 }
  0x69   : > { %1126 = vmatmul.msk.bf16.gmra.mxu0 %vm401_vm0, %v1160_v28  ;;  %1134 = vmatmul.msk.bf16.gmra.mxu2 %vm401_vm0, %v1168_v29 }
  0x6a   : > { %1150 = vmatmul.msk.bf16.gmra.mxu3 %vm401_vm0, %v1168_v29  ;;  %1142 = vmatmul.msk.bf16.gmra.mxu1 %vm401_vm0, %v1160_v28 }
  0x79   : > { %1127 = vmatmul.msk.bf16.gmra.mxu0 %vm401_vm0, %v1161_v30  ;;  %1135 = vmatmul.msk.bf16.gmra.mxu2 %vm401_vm0, %v1169_v31 }
  0x7a   : > { %1151 = vmatmul.msk.bf16.gmra.mxu3 %vm401_vm0, %v1169_v31  ;;  %1143 = vmatmul.msk.bf16.gmra.mxu1 %vm401_vm0, %v1161_v30 }
  0x89   : > { %1128 = vmatmul.msk.bf16.gmra.mxu0 %vm401_vm0, %v1162_v32  ;;  %1136 = vmatmul.msk.bf16.gmra.mxu2 %vm401_vm0, %v1170_v33 }
  0x8a   : > { %1152 = vmatmul.msk.bf16.gmra.mxu3 %vm401_vm0, %v1170_v33  ;;  %1144 = vmatmul.msk.bf16.gmra.mxu1 %vm401_vm0, %v1162_v32 }
  0x96   : > { %v459_v34 = vpop.f32.mrf.mxu0 }
  0x97   : > { %v548_v35 = vpop.f32.mrf.mxu1  ;;  %v830_v40 = vmul.f32 %v459_v34, %v459_v34 }
  0x98   : > { %v696_v44 = vadd.f32 %v1528_v37, %v548_v35 }
  0x9c   : > { %v1523_v36 = vpop.f32.mrf.mxu2 }
  0x9d   : > { %v588_v39 = vpop.f32.mrf.mxu3 }
  0x9e   : > { %v461_v38 = vpop.f32.mrf.mxu0  ;;  %v712_v51 = vadd.f32 %v1528_v37, %v588_v39 }
  0x9f   : > { %v1180_v41 = vpack.c.bf16 %v461_v38, %v459_v34  ;;  %v792_v42 = vadd.f32 %v461_v38, %v459_v34  ;;  %v831_v43 = vmul.f32 %v461_v38, %v461_v38  ;;  %v550_v46 = vpop.f32.mrf.mxu1 }
  0xa0   : > { %v697_v47 = vadd.f32 %v1528_v37, %v550_v46 }
  0xa1   : > { %1181 = vst [vmem:[%s1534_s30] sm:$0xff] %v1180_v41   ;;  %v862_v45 = vadd.f32 %v831_v43, %v830_v40 }
  0xa2   : > { %v1260_v49 = vpack.c.bf16 %v697_v47, %v696_v44 }
  0xa4   : > { %v1545_v48 = vpop.f32.mrf.mxu2  ;;  %1261 = vst [vmem:[%s1543_s8] sm:$0xff] %v1260_v49  }
  0xa5   : > { %v1220_v50 = vpack.c.bf16 %v1545_v48, %v1523_v36  ;;  %v590_v53 = vpop.f32.mrf.mxu3 }
  0xa6   : > { %v464_v52 = vpop.f32.mrf.mxu0  ;;  %v713_v56 = vadd.f32 %v1528_v37, %v590_v53 }
  0xa7   : > { %v793_v54 = vadd.f32 %v792_v42, %v464_v52  ;;  %v832_v55 = vmul.f32 %v464_v52, %v464_v52  ;;  %1344 = vst [vmem:[%s1534_s30 + $0x40] sm:$0xff] %v1220_v50   ;;  %v553_v59 = vpop.f32.mrf.mxu1 }
  0xa8   : > { %v1300_v58 = vpack.c.bf16 %v713_v56, %v712_v51  ;;  %v698_v2 = vadd.f32 %v1528_v37, %v553_v59 }
  0xa9   : > { %v863_v57 = vadd.f32 %v862_v45, %v832_v55 }
  0xaa   : > { %1359 = vst [vmem:[%s1543_s8 + $0x40] sm:$0xff] %v1300_v58  }
  0xac   : > { %v1554_v60 = vpop.f32.mrf.mxu2 }
  0xad   : > { %v593_v62 = vpop.f32.mrf.mxu3 }
  0xae   : > { %v466_v61 = vpop.f32.mrf.mxu0  ;;  %v714_v9 = vadd.f32 %v1528_v37, %v593_v62 }
  0xaf   : > { %v1185_v63 = vpack.c.bf16 %v466_v61, %v464_v52  ;;  %v794_v0 = vadd.f32 %v793_v54, %v466_v61  ;;  %v833_v1 = vmul.f32 %v466_v61, %v466_v61  ;;  %v555_v4 = vpop.f32.mrf.mxu1 }
  0xb0   : > { %v699_v5 = vadd.f32 %v1528_v37, %v555_v4 }
  0xb1   : > { %1337 = vst [vmem:[%s1534_s30 + $0x8] sm:$0xff] %v1185_v63   ;;  %v864_v3 = vadd.f32 %v863_v57, %v833_v1 }
  0xb2   : > { %v1265_v7 = vpack.c.bf16 %v699_v5, %v698_v2 }
  0xb4   : > { %v1559_v6 = vpop.f32.mrf.mxu2  ;;  %1352 = vst [vmem:[%s1543_s8 + $0x8] sm:$0xff] %v1265_v7  }
  0xb5   : > { %v1225_v8 = vpack.c.bf16 %v1559_v6, %v1554_v60  ;;  %v595_v11 = vpop.f32.mrf.mxu3 }
  0xb6   : > { %v469_v10 = vpop.f32.mrf.mxu0  ;;  %v715_v14 = vadd.f32 %v1528_v37, %v595_v11 }
  0xb7   : > { %v1565_v12 = vadd.f32 %v794_v0, %v469_v10  ;;  %v834_v13 = vmul.f32 %v469_v10, %v469_v10  ;;  %1345 = vst [vmem:[%s1534_s30 + $0x48] sm:$0xff] %v1225_v8   ;;  %v558_v17 = vpop.f32.mrf.mxu1 }
  0xb8   : > { %v1305_v16 = vpack.c.bf16 %v715_v14, %v714_v9  ;;  %v700_v22 = vadd.f32 %v1528_v37, %v558_v17 }
  0xb9   : > { %v1569_v15 = vadd.f32 %v864_v3, %v834_v13 }
  0xba   : > { %1360 = vst [vmem:[%s1543_s8 + $0x48] sm:$0xff] %v1305_v16  }
  0xbc   : > { %v1572_v18 = vpop.f32.mrf.mxu2 }
  0xbd   : > { %v598_v20 = vpop.f32.mrf.mxu3 }
  0xbe   : > { %v1574_v19 = vpop.f32.mrf.mxu0  ;;  %v716_v28 = vadd.f32 %v1528_v37, %v598_v20 }
  0xbf   : > { %v1190_v21 = vpack.c.bf16 %v1574_v19, %v469_v10  ;;  %v560_v23 = vpop.f32.mrf.mxu1 }
  0xc0   : > { %v701_v24 = vadd.f32 %v1528_v37, %v560_v23 }
  0xc1   : > { %1338 = vst [vmem:[%s1534_s30 + $0x10] sm:$0xff] %v1190_v21  }
  0xc2   : > { %v1270_v26 = vpack.c.bf16 %v701_v24, %v700_v22 }
  0xc4   : > { %v1580_v25 = vpop.f32.mrf.mxu2  ;;  %1353 = vst [vmem:[%s1543_s8 + $0x10] sm:$0xff] %v1270_v26   ;;  %v835_v26 = vmul.f32 %v1574_v19, %v1574_v19 }
  0xc5   : > { %v1230_v27 = vpack.c.bf16 %v1580_v25, %v1572_v18  ;;  %v600_v30 = vpop.f32.mrf.mxu3 }
  0xc6   : > { %v1585_v29 = vpop.f32.mrf.mxu0  ;;  %v717_v31 = vadd.f32 %v1528_v37, %v600_v30 }
  0xc7   : > { %1346 = vst [vmem:[%s1534_s30 + $0x50] sm:$0xff] %v1230_v27   ;;  %v563_v33 = vpop.f32.mrf.mxu1  ;;  %v836_v30 = vmul.f32 %v1585_v29, %v1585_v29 }
  0xc8   : > { %v1310_v32 = vpack.c.bf16 %v717_v31, %v716_v28  ;;  %v702_v40 = vadd.f32 %v1528_v37, %v563_v33  ;;  %v796_v28 = vadd.f32 %v1565_v12, %v1574_v19 }
  0xca   : > { %1361 = vst [vmem:[%s1543_s8 + $0x50] sm:$0xff] %v1310_v32   ;;  %v866_v32 = vadd.f32 %v1569_v15, %v835_v26  ;;  %v797_v33 = vadd.f32 %v796_v28, %v1585_v29 }
  0xcc   : > { %v1591_v34 = vpop.f32.mrf.mxu2 }
  0xcd   : > { %v603_v38 = vpop.f32.mrf.mxu3 }
  0xce   : > { %v1593_v35 = vpop.f32.mrf.mxu0  ;;  %v718_v46 = vadd.f32 %v1528_v37, %v603_v38 }
  0xcf   : > { %v1195_v39 = vpack.c.bf16 %v1593_v35, %v1585_v29  ;;  %v565_v41 = vpop.f32.mrf.mxu1  ;;  %v837_v38 = vmul.f32 %v1593_v35, %v1593_v35 }
  0xd0   : > { %v703_v42 = vadd.f32 %v1528_v37, %v565_v41  ;;  %v798_v41 = vadd.f32 %v797_v33, %v1593_v35 }
  0xd1   : > { %1339 = vst [vmem:[%s1534_s30 + $0x18] sm:$0xff] %v1195_v39  }
  0xd2   : > { %v1275_v44 = vpack.c.bf16 %v703_v42, %v702_v40  ;;  %v867_v40 = vadd.f32 %v866_v32, %v836_v30 }
  0xd4   : > { %v1600_v43 = vpop.f32.mrf.mxu2  ;;  %1354 = vst [vmem:[%s1543_s8 + $0x18] sm:$0xff] %v1275_v44  }
  0xd5   : > { %v1235_v45 = vpack.c.bf16 %v1600_v43, %v1591_v34  ;;  %v605_v49 = vpop.f32.mrf.mxu3 }
  0xd6   : > { %v479_v47 = vpop.f32.mrf.mxu0  ;;  %v719_v50 = vadd.f32 %v1528_v37, %v605_v49 }
  0xd7   : > { %1347 = vst [vmem:[%s1534_s30 + $0x58] sm:$0xff] %v1235_v45   ;;  %v568_v52 = vpop.f32.mrf.mxu1  ;;  %v838_v42 = vmul.f32 %v479_v47, %v479_v47  ;;  %v868_v45 = vadd.f32 %v867_v40, %v837_v38  ;;  %v847_v38 = vmul.f32 %v1545_v48, %v1545_v48 }
  0xd8   : > { %v1315_v51 = vpack.c.bf16 %v719_v50, %v718_v46  ;;  %v704_v57 = vadd.f32 %v1528_v37, %v568_v52  ;;  %v799_v46 = vadd.f32 %v798_v41, %v479_v47 }
  0xd9   : > { %v869_v50 = vadd.f32 %v868_v45, %v838_v42 }
  0xda   : > { %1362 = vst [vmem:[%s1543_s8 + $0x58] sm:$0xff] %v1315_v51  }
  0xdc   : > { %v1609_v53 = vpop.f32.mrf.mxu2 }
  0xdd   : > { %v608_v55 = vpop.f32.mrf.mxu3 }
  0xde   : > { %v481_v54 = vpop.f32.mrf.mxu0  ;;  %v720_v0 = vadd.f32 %v1528_v37, %v608_v55 }
  0xdf   : > { %v1200_v56 = vpack.c.bf16 %v481_v54, %v479_v47  ;;  %v570_v58 = vpop.f32.mrf.mxu1  ;;  %v839_v49 = vmul.f32 %v481_v54, %v481_v54  ;;  %v800_v15 = vadd.f32 %v799_v46, %v481_v54 }
  0xe0   : > { %v705_v59 = vadd.f32 %v1528_v37, %v570_v58 }
  0xe1   : > { %1340 = vst [vmem:[%s1534_s30 + $0x20] sm:$0xff] %v1200_v56   ;;  %v870_v56 = vadd.f32 %v869_v50, %v839_v49 }
  0xe2   : > { %v1280_v62 = vpack.c.bf16 %v705_v59, %v704_v57 }
  0xe4   : > { %v1614_v61 = vpop.f32.mrf.mxu2  ;;  %1355 = vst [vmem:[%s1543_s8 + $0x20] sm:$0xff] %v1280_v62  }
  0xe5   : > { %v1240_v63 = vpack.c.bf16 %v1614_v61, %v1609_v53  ;;  %v610_v2 = vpop.f32.mrf.mxu3 }
  0xe6   : > { %v484_v1 = vpop.f32.mrf.mxu0  ;;  %v721_v3 = vadd.f32 %v1528_v37, %v610_v2 }
  0xe7   : > { %1348 = vst [vmem:[%s1534_s30 + $0x60] sm:$0xff] %v1240_v63   ;;  %v573_v5 = vpop.f32.mrf.mxu1  ;;  %v840_v29 = vmul.f32 %v484_v1, %v484_v1  ;;  %v801_v35 = vadd.f32 %v800_v15, %v484_v1  ;;  %v849_v15 = vmul.f32 %v1559_v6, %v1559_v6 }
  0xe8   : > { %v1320_v4 = vpack.c.bf16 %v721_v3, %v720_v0  ;;  %v706_v11 = vadd.f32 %v1528_v37, %v573_v5 }
  0xe9   : > { %v871_v0 = vadd.f32 %v870_v56, %v840_v29 }
  0xea   : > { %1363 = vst [vmem:[%s1543_s8 + $0x60] sm:$0xff] %v1320_v4  }
  0xec   : > { %v1623_v7 = vpop.f32.mrf.mxu2 }
  0xed   : > { %v613_v9 = vpop.f32.mrf.mxu3 }
  0xee   : > { %v486_v8 = vpop.f32.mrf.mxu0  ;;  %v722_v20 = vadd.f32 %v1528_v37, %v613_v9 }
  0xef   : > { %v1205_v10 = vpack.c.bf16 %v486_v8, %v484_v1  ;;  %v575_v13 = vpop.f32.mrf.mxu1  ;;  %v841_v58 = vmul.f32 %v486_v8, %v486_v8  ;;  %v802_v2 = vadd.f32 %v801_v35, %v486_v8 }
  0xf0   : > { %v707_v14 = vadd.f32 %v1528_v37, %v575_v13 }
  0xf1   : > { %1341 = vst [vmem:[%s1534_s30 + $0x28] sm:$0xff] %v1205_v10   ;;  %v872_v1 = vadd.f32 %v871_v0, %v841_v58  ;;  %v851_v58 = vmul.f32 %v1580_v25, %v1580_v25  ;;  %v854_v0 = vmul.f32 %v1609_v53, %v1609_v53 }
  0xf2   : > { %v1285_v21 = vpack.c.bf16 %v707_v14, %v706_v11 }
  0xf4   : > { %v1628_v16 = vpop.f32.mrf.mxu2  ;;  %1356 = vst [vmem:[%s1543_s8 + $0x28] sm:$0xff] %v1285_v21  }
  0xf5   : > { %v1245_v17 = vpack.c.bf16 %v1628_v16, %v1623_v7  ;;  %v615_v23 = vpop.f32.mrf.mxu3 }
  0xf6   : > { %v489_v22 = vpop.f32.mrf.mxu0  ;;  %v723_v24 = vadd.f32 %v1528_v37, %v615_v23 }
  0xf7   : > { %1349 = vst [vmem:[%s1534_s30 + $0x68] sm:$0xff] %v1245_v17   ;;  %v578_v31 = vpop.f32.mrf.mxu1  ;;  %v842_v3 = vmul.f32 %v489_v22, %v489_v22  ;;  %v803_v5 = vadd.f32 %v802_v2, %v489_v22 }
  0xf8   : > { %v1325_v27 = vpack.c.bf16 %v723_v24, %v722_v20  ;;  %v708_v52 = vadd.f32 %v1528_v37, %v578_v31 }
  0xf9   : > { %v873_v13 = vadd.f32 %v872_v1, %v842_v3  ;;  %v855_v3 = vmul.f32 %v1614_v61, %v1614_v61 }
  0xfa   : > { %1364 = vst [vmem:[%s1543_s8 + $0x68] sm:$0xff] %v1325_v27  }
  0xfc   : > { %v1647_v39 = vpop.f32.mrf.mxu2 }
  0xfd   : > { %v618_v19 = vpop.f32.mrf.mxu3 }
  0xfe   : > { %v491_v12 = vpop.f32.mrf.mxu0  ;;  %v724_v59 = vadd.f32 %v1528_v37, %v618_v19 }
  0xff   : > { %v1210_v44 = vpack.c.bf16 %v491_v12, %v489_v22  ;;  %v580_v51 = vpop.f32.mrf.mxu1  ;;  %v843_v9 = vmul.f32 %v491_v12, %v491_v12  ;;  %v804_v14 = vadd.f32 %v803_v5, %v491_v12  ;;  %v846_v22 = vmul.f32 %v1523_v36, %v1523_v36 }
 0x100   : > { %v709_v55 = vadd.f32 %v1528_v37, %v580_v51  ;;  %v848_v12 = vmul.f32 %v1554_v60, %v1554_v60 }
 0x101   : > { %1342 = vst [vmem:[%s1534_s30 + $0x30] sm:$0xff] %v1210_v44   ;;  %v874_v21 = vadd.f32 %v873_v13, %v843_v9  ;;  %v857_v9 = vmul.f32 %v1628_v16, %v1628_v16 }
 0x102   : > { %v1290_v62 = vpack.c.bf16 %v709_v55, %v708_v52 }
 0x104   : > { %v1653_v57 = vpop.f32.mrf.mxu2  ;;  %1357 = vst [vmem:[%s1543_s8 + $0x30] sm:$0xff] %v1290_v62  }
 0x105   : > { %v1250_v47 = vpack.c.bf16 %v1653_v57, %v1647_v39  ;;  %v620_v63 = vpop.f32.mrf.mxu3 }
 0x106   : > { %v494_v54 = vpop.f32.mrf.mxu0  ;;  %v725_v4 = vadd.f32 %v1528_v37, %v620_v63 }
 0x107   : > { %1350 = vst [vmem:[%s1534_s30 + $0x70] sm:$0xff] %v1250_v47   ;;  %v583_v11 = vpop.f32.mrf.mxu1  ;;  %v844_v17 = vmul.f32 %v494_v54, %v494_v54  ;;  %v805_v23 = vadd.f32 %v804_v14, %v494_v54 }
 0x108   : > { %v1330_v10 = vpack.c.bf16 %v725_v4, %v724_v59  ;;  %v710_v42 = vadd.f32 %v1528_v37, %v583_v11 }
 0x109   : > { %v875_v26 = vadd.f32 %v874_v21, %v844_v17 }
 0x10a   : > { %1365 = vst [vmem:[%s1543_s8 + $0x70] sm:$0xff] %v1330_v10  }
 0x10c   : > { %v1662_v20 = vpop.f32.mrf.mxu2 }
 0x10d   : > { %v623_v24 = vpop.f32.mrf.mxu3 }
 0x10e   : > { %v496_v8 = vpop.f32.mrf.mxu0  ;;  %v726_v49 = vadd.f32 %v1528_v37, %v623_v24 }
 0x10f   : > { %v1215_v27 = vpack.c.bf16 %v496_v8, %v494_v54  ;;  %v806_v28 = vadd.f32 %v805_v23, %v496_v8  ;;  %v845_v30 = vmul.f32 %v496_v8, %v496_v8  ;;  %v585_v33 = vpop.f32.mrf.mxu1  ;;  %v853_v54 = vmul.f32 %v1600_v43, %v1600_v43 }
 0x110   : > { %v711_v44 = vadd.f32 %v1528_v37, %v585_v33 }
 0x111   : > { %1343 = vst [vmem:[%s1534_s30 + $0x38] sm:$0xff] %v1215_v27   ;;  %v807_v31 = vadd.f32 %v806_v28, %v1523_v36  ;;  %v876_v32 = vadd.f32 %v875_v26, %v845_v30 }
 0x112   : > { %v1295_v50 = vpack.c.bf16 %v711_v44, %v710_v42 }
 0x113   : > { %v808_v40 = vadd.f32 %v807_v31, %v1545_v48  ;;  %v877_v41 = vadd.f32 %v876_v32, %v846_v22 }
 0x114   : > { %v536_v19 = vpop.f32.mrf.mxu2  ;;  %1358 = vst [vmem:[%s1543_s8 + $0x38] sm:$0xff] %v1295_v50  }
 0x115   : > { %v809_v36 = vadd.f32 %v808_v40, %v1554_v60  ;;  %v878_v45 = vadd.f32 %v877_v41, %v847_v38  ;;  %v1255_v46 = vpack.c.bf16 %v536_v19, %v1662_v20  ;;  %v625_v48 = vpop.f32.mrf.mxu3  ;;  %v850_v60 = vmul.f32 %v1572_v18, %v1572_v18 }
 0x116   : > { %v727_v52 = vadd.f32 %v1528_v37, %v625_v48  ;;  %v861_v26 = vmul.f32 %v536_v19, %v536_v19 }
 0x117   : > { %v810_v51 = vadd.f32 %v809_v36, %v1559_v6  ;;  %v879_v29 = vadd.f32 %v878_v45, %v848_v12  ;;  %1351 = vst [vmem:[%s1534_s30 + $0x78] sm:$0xff] %v1255_v46   ;;  %v852_v6 = vmul.f32 %v1591_v34, %v1591_v34 }
 0x118   : > { %v1335_v35 = vpack.c.bf16 %v727_v52, %v726_v49 }
 0x119   : > { %v811_v55 = vadd.f32 %v810_v51, %v1572_v18  ;;  %v880_v56 = vadd.f32 %v879_v29, %v849_v15 }
 0x11a   : > { %1366 = vst [vmem:[%s1543_s8 + $0x78] sm:$0xff] %v1335_v35  }
 0x11b   : > { %v812_v47 = vadd.f32 %v811_v55, %v1580_v25  ;;  %v881_v59 = vadd.f32 %v880_v56, %v850_v60 }
 0x11d   : > { %v882_v62 = vadd.f32 %v881_v59, %v851_v58  ;;  %v813_v37 = vadd.f32 %v812_v47, %v1591_v34  ;;  %v856_v34 = vmul.f32 %v1623_v7, %v1623_v7 }
 0x11f   : > { %v814_v18 = vadd.f32 %v813_v37, %v1600_v43  ;;  %v883_v63 = vadd.f32 %v882_v62, %v852_v6 }
 0x121   : > { %v815_v2 = vadd.f32 %v814_v18, %v1609_v53  ;;  %v884_v25 = vadd.f32 %v883_v63, %v853_v54 }
 0x123   : > { %v816_v4 = vadd.f32 %v815_v2, %v1614_v61  ;;  %v885_v1 = vadd.f32 %v884_v25, %v854_v0  ;;  %v858_v61 = vmul.f32 %v1647_v39, %v1647_v39 }
 0x125   : > { %v817_v5 = vadd.f32 %v816_v4, %v1623_v7  ;;  %v886_v43 = vadd.f32 %v885_v1, %v855_v3  ;;  %v859_v7 = vmul.f32 %v1653_v57, %v1653_v57 }
 0x127   : > { %v818_v10 = vadd.f32 %v817_v5, %v1628_v16  ;;  %v887_v53 = vadd.f32 %v886_v43, %v856_v34  ;;  %v860_v16 = vmul.f32 %v1662_v20, %v1662_v20 }
 0x129   : > { %v819_v11 = vadd.f32 %v818_v10, %v1647_v39  ;;  %v888_v13 = vadd.f32 %v887_v53, %v857_v9 }
 0x12b   : > { %v889_v14 = vadd.f32 %v888_v13, %v858_v61  ;;  %v820_v17 = vadd.f32 %v819_v11, %v1653_v57 }
 0x12d   : > { %v890_v21 = vadd.f32 %v889_v14, %v859_v7  ;;  %v821_v23 = vadd.f32 %v820_v17, %v1662_v20 }
 0x12f   : > { %v891_v8 = vadd.f32 %v890_v21, %v860_v16  ;;  %v822_v24 = vadd.f32 %v821_v23, %v536_v19 }
 0x131   : > { %v823_v27 = vrot.slane %v822_v24, 4  ;;  %v892_v28 = vadd.f32 %v891_v8, %v861_v26 }
 0x133   : > { %v824_v39 = vadd.f32 %v823_v27, %v822_v24  ;;  %v893_v30 = vrot.slane %v892_v28, 4 }
 0x135   : > { %v825_v22 = vrot.slane %v824_v39, 2  ;;  %v894_v31 = vadd.f32 %v893_v30, %v892_v28 }
 0x137   : > { %v826_v32 = vadd.f32 %v825_v22, %v824_v39  ;;  %v895_v57 = vrot.slane %v894_v31, 2 }
 0x139   : > { %v827_v33 = vrot.slane %v826_v32, 1  ;;  %v896_v38 = vadd.f32 %v895_v57, %v894_v31 }
 0x13b   : > { %v828_v20 = vadd.f32 %v827_v33, %v826_v32  ;;  %v897_v40 = vrot.slane %v896_v38, 1 }
 0x13d   : > { %829 = vst [vmem:[%s251_s12] sm:$0x1] %v828_v20  ;;  %v898_v41 = vadd.f32 %v897_v40, %v896_v38 }
 0x13f   : > { %899 = vst [vmem:[%s251_s12 + $0x1] sm:$0x1] %v898_v41 }
 0x140 PF: > { %s16_s18 = sadd.s32 1, %s1388_s18  }
 0x141   : > { %p13_p5 = scmp.ge.s32.totalorder %s16_s18, 4  }
 0x143   :  { %15 = sbr.rel (!%p13_p5) target bundleno = 1 (0x1), region = 86 }

// kernel: residual_block_forward.4
= control target key start
LH: loop header
LB: loop body
LE: loop exit
PB: predicated region body
PF: predicated region fallthrough
CT: control target
= control target key end

     0   :  { %s1313_s18 = smov 0   ;;  %s1707_s0 = inlined_call_operand.vmem [shape: bf16[512,128], index: 0, kind: input, shape index: {}]   ;;  %s1708_s1 = inlined_call_operand.vmem [shape: f32[1,128], index: 1, kind: input, shape index: {}]   ;;  %s1709_s2 = inlined_call_operand.vmem [shape: f32[1,128], index: 2, kind: input, shape index: {}]   ;;  %s1710_s3 = inlined_call_operand.vmem [shape: bf16[128,128], index: 3, kind: input, shape index: {}]   ;;  %s1711_s4 = inlined_call_operand.vmem [shape: bf16[512,128], index: 4, kind: output, shape index: {0}]   ;;  %s1712_s5 = inlined_call_operand.vmem [shape: f32[2,2,128], index: 5, kind: output, shape index: {1}]  }
   0x1 LB: > { %s1319_s19 = sadd.s32 4294967295, %s1281_s18   ;;  %p970_p0 = scmp.ge.s32.totalorder %s1281_s18, 1  ;;  %s1281_s18 = sphi %s1313_s18, %s16_s18  }
   0x2   : > { %p191_p1 = scmp.lt.s32.totalorder %s1281_s18, 3 }
   0x4   : > { %p192_p2 = pnand %p970_p0, %p191_p1 }
   0x5   : > { %s971_s22 = sshll.u32 (!%p192_p2), %s1319_s19, 5  ;;  %s976_s10 = sshll.u32 (!%p192_p2), %s1319_s19, 8 }
   0x6   : > { %195 = sbr.rel (%p192_p2) target bundleno = 290 (0x122), region = 36  ;;  %p224_p3 = scmp.lt.s32.totalorder (!%p192_p2), %s971_s22, 63 }
   0x7   : > { %p235_p4 = scmp.lt.s32.totalorder (!%p192_p2), %s1319_s19, 1 }
   0xb   : > { %v1066_v0 = vld [vmem:[%s1710_s3 + $0x38] sm:$0xff]  ;;  %v1065_v1 = vld [vmem:[%s1710_s3 + $0x30] sm:$0xff]  ;;  %s1722_s22 = smov (!%p224_p3, %s971_s22), 63  ;;  %v1064_v2 = vld [vmem:[%s1710_s3 + $0x28] sm:$0xff]  ;;  %v408_v4 = vlaneseq  ;;  %v1367_v20 = vstv %s976_s10  ;;  %s1724_s19 = smov (!%p235_p4, %s1319_s19), 1 }
   0xc   : > { %618 = vmatpush.bf16.msra.mxu0 %v1066_v0  ;;  %1241 = vmatpush.bf16.msra.mxu1 %v1066_v0  ;;  %s972_s25 = sshll.u32 %s1722_s22, 2  ;;  %v1063_v5 = vld [vmem:[%s1710_s3 + $0x20] sm:$0xff]  ;;  %v1062_v14 = vld [vmem:[%s1710_s3 + $0x18] sm:$0xff]  ;;  %v1061_v25 = vld [vmem:[%s1710_s3 + $0x10] sm:$0xff]  ;;  %s975_s22 = sshll.u32 %s1724_s19, 1 }
   0xd   : > { %1242 = vmatpush.bf16.msra.mxu2 %v1066_v0  ;;  %1243 = vmatpush.bf16.msra.mxu3 %v1066_v0  ;;  %s1341_s30 = scalar_lea.vmem %s1707_s0, %s972_s25  ;;  %v1351_v9 = vld [vmem:[%s1708_s1] ss:$0 sm:$0xff]  ;;  %v1355_v11 = vshrl.u32 %v408_v4, 7  ;;  %v1060_v40 = vld [vmem:[%s1710_s3 + $0x8] sm:$0xff]  ;;  %s1571_s27 = scalar_lea.vmem %s1711_s4, %s972_s25 }
   0xe   : > { %v1068_v3 = vld [vmem:[%s1341_s30] sm:$0xff]   ;;  %v1211_v32 = vld [vmem:[%s1341_s30 + $0x8] sm:$0xff]   ;;  %s238_s29 = scalar_lea.vmem %s1712_s5, %s975_s22 }
   0xf   : > { %v1214_v6 = vld [vmem:[%s1341_s30 + $0x20] sm:$0xff]   ;;  %v1069_v7 = vunpack.c.l.bf16 %v1068_v3  ;;  %v1070_v8 = vunpack.c.h.bf16 %v1068_v3  ;;  %v410_v21 = vadd.s32 8, %v1355_v11  ;;  %v417_v24 = vadd.s32 64, %v1355_v11  ;;  %v1215_v51 = vld [vmem:[%s1341_s30 + $0x28] sm:$0xff]  }
  0x10   : > { %619 = vmatpush.bf16.msra.mxu0 %v1065_v1  ;;  %1244 = vmatpush.bf16.msra.mxu1 %v1065_v1  ;;  %v1218_v10 = vld [vmem:[%s1341_s30 + $0x40] sm:$0xff]   ;;  %v1085_v12 = vunpack.c.l.bf16 %v1214_v6  ;;  %v1086_v13 = vunpack.c.h.bf16 %v1214_v6  ;;  %v418_v26 = vadd.s32 72, %v1355_v11  ;;  %v442_v31 = vadd.s32 %v1367_v20, %v1355_v11  ;;  %v1219_v58 = vld [vmem:[%s1341_s30 + $0x48] sm:$0xff]  }
  0x11   : > { %1245 = vmatpush.bf16.msra.mxu2 %v1065_v1  ;;  %1246 = vmatpush.bf16.msra.mxu3 %v1065_v1  ;;  %v1101_v15 = vunpack.c.l.bf16 %v1218_v10  ;;  %v1102_v16 = vunpack.c.h.bf16 %v1218_v10  ;;  %v307_v17 = vmul.f32 %v1351_v9, %v1069_v7  ;;  %v308_v18 = vmul.f32 %v1351_v9, %v1070_v8  ;;  %v1365_v19 = vld [vmem:[%s1709_s2] ss:$0 sm:$0xff] }
  0x12   : > { %v315_v22 = vmul.f32 %v1351_v9, %v1085_v12  ;;  %v316_v23 = vmul.f32 %v1351_v9, %v1086_v13  ;;  %v411_v33 = vadd.s32 16, %v1355_v11  ;;  %v425_v34 = vadd.s32 128, %v1355_v11  ;;  %v1222_v52 = vld [vmem:[%s1341_s30 + $0x60] sm:$0xff]  }
  0x13   : > { %v323_v27 = vmul.f32 %v1351_v9, %v1101_v15  ;;  %v324_v28 = vmul.f32 %v1351_v9, %v1102_v16  ;;  %v343_v29 = vadd.f32 %v1365_v19, %v307_v17  ;;  %v344_v30 = vadd.f32 %v1365_v19, %v308_v18  ;;  %v1059_v55 = vld [vmem:[%s1710_s3] sm:$0xff] }
  0x14   : > { %620 = vmatpush.bf16.msra.mxu0 %v1064_v2  ;;  %1247 = vmatpush.bf16.msra.mxu1 %v1064_v2  ;;  %v426_v35 = vadd.s32 136, %v1355_v11  ;;  %v443_v36 = vadd.s32 %v1367_v20, %v410_v21  ;;  %v351_v37 = vadd.f32 %v1365_v19, %v315_v22  ;;  %v352_v38 = vadd.f32 %v1365_v19, %v316_v23 }
  0x15   : > { %1248 = vmatpush.bf16.msra.mxu2 %v1064_v2  ;;  %1249 = vmatpush.bf16.msra.mxu3 %v1064_v2  ;;  %v450_v39 = vadd.s32 %v1367_v20, %v417_v24  ;;  %v451_v41 = vadd.s32 %v1367_v20, %v418_v26  ;;  %v359_v42 = vadd.f32 %v1365_v19, %v323_v27  ;;  %v375_v44 = vmax.f32 %v343_v29, 0.0 }
  0x16   : > { %v360_v43 = vadd.f32 %v1365_v19, %v324_v28  ;;  %v376_v45 = vmax.f32 %v344_v30, 0.0  ;;  %v1073_v46 = vunpack.c.l.bf16 %v1211_v32  ;;  %v1074_v47 = vunpack.c.h.bf16 %v1211_v32 }
  0x17   : > { %vm474_vm0 = vcmp.lt.s32.totalorder %v442_v31, 392  ;;  %v1398_v48 = vadd.s32 %v1367_v20, %v411_v33  ;;  %v458_v49 = vadd.s32 %v1367_v20, %v425_v34  ;;  %v459_v50 = vadd.s32 %v1367_v20, %v426_v35  ;;  %v1212_v35 = vld [vmem:[%s1341_s30 + $0x10] sm:$0xff]  }
  0x18   : > { %621 = vmatpush.bf16.msra.mxu0 %v1063_v5  ;;  %1250 = vmatpush.bf16.msra.mxu1 %v1063_v5  ;;  %vm475_vm1 = vcmp.lt.s32.totalorder %v443_v36, 392  ;;  %v383_v53 = vmax.f32 %v351_v37, 0.0  ;;  %v384_v54 = vmax.f32 %v352_v38, 0.0  ;;  %vm482_vm2 = vcmp.lt.s32.totalorder %v450_v39, 392 }
  0x19   : > { %1251 = vmatpush.bf16.msra.mxu2 %v1063_v5  ;;  %1252 = vmatpush.bf16.msra.mxu3 %v1063_v5  ;;  %vm483_vm3 = vcmp.lt.s32.totalorder %v451_v41, 392  ;;  %v391_v56 = vmax.f32 %v359_v42, 0.0  ;;  %v392_v57 = vmax.f32 %v360_v43, 0.0  ;;  %v1117_v59 = vunpack.c.l.bf16 %v1222_v52  ;;  %vm1413_vm6 = vmpackc.low %vm475_vm1, %vm474_vm0 }
  0x1a   : > { %v1010_v60 = vpack.c.bf16 %v376_v45, %v375_v44  ;;  %v309_v61 = vmul.f32 %v1351_v9, %v1073_v46  ;;  %v310_v62 = vmul.f32 %v1351_v9, %v1074_v47  ;;  %v1089_v63 = vunpack.c.l.bf16 %v1215_v51  ;;  %vm1419_vm7 = vmpackc.low %vm483_vm3, %vm482_vm2 }
  0x1b   : > { %vm490_vm4 = vcmp.lt.s32.totalorder %v458_v49, 392  ;;  %vm491_vm5 = vcmp.lt.s32.totalorder %v459_v50, 392  ;;  %v1118_v0 = vunpack.c.h.bf16 %v1222_v52  ;;  %v331_v1 = vmul.f32 %v1351_v9, %v1117_v59  ;;  %v1223_v52 = vld [vmem:[%s1341_s30 + $0x68] sm:$0xff]   ;;  %v1220_v59 = vld [vmem:[%s1341_s30 + $0x50] sm:$0xff]  }
  0x1c   : > { %622 = vmatpush.bf16.msra.mxu0 %v1062_v14  ;;  %1253 = vmatpush.bf16.msra.mxu1 %v1062_v14  ;;  %v1022_v3 = vpack.c.bf16 %v384_v54, %v383_v53  ;;  %v1090_v4 = vunpack.c.h.bf16 %v1215_v51  ;;  %v1105_v5 = vunpack.c.l.bf16 %v1219_v58  ;;  %v1106_v6 = vunpack.c.h.bf16 %v1219_v58  ;;  %vm1033_vm8 = vmpackc.low %vm491_vm5, %vm490_vm4  ;;  %v1216_v51 = vld [vmem:[%s1341_s30 + $0x30] sm:$0xff]  }
  0x1d   : > { %1254 = vmatpush.bf16.msra.mxu2 %v1062_v14  ;;  %1255 = vmatpush.bf16.msra.mxu3 %v1062_v14  ;;  %v1034_v8 = vpack.c.bf16 %v392_v57, %v391_v56  ;;  %v332_v10 = vmul.f32 %v1351_v9, %v1118_v0  ;;  %v367_v12 = vadd.f32 %v1365_v19, %v331_v1  ;;  %v433_v13 = vadd.s32 192, %v1355_v11 }
  0x1e   : > { %v345_v14 = vadd.f32 %v1365_v19, %v309_v61  ;;  %v346_v15 = vadd.f32 %v1365_v19, %v310_v62  ;;  %v412_v16 = vadd.s32 24, %v1355_v11  ;;  %v317_v17 = vmul.f32 %v1351_v9, %v1089_v63 }
  0x1f   : > { %v368_v18 = vadd.f32 %v1365_v19, %v332_v10  ;;  %v399_v21 = vmax.f32 %v367_v12, 0.0  ;;  %v434_v22 = vadd.s32 200, %v1355_v11  ;;  %v466_v23 = vadd.s32 %v1367_v20, %v433_v13 }
  0x20   : > { %623 = vmatpush.bf16.msra.mxu0 %v1061_v25  ;;  %1256 = vmatpush.bf16.msra.mxu1 %v1061_v25  ;;  %v318_v24 = vmul.f32 %v1351_v9, %v1090_v4  ;;  %v325_v26 = vmul.f32 %v1351_v9, %v1105_v5  ;;  %v326_v27 = vmul.f32 %v1351_v9, %v1106_v6  ;;  %v420_v28 = vadd.s32 88, %v1355_v11 }
  0x21   : > { %1257 = vmatpush.bf16.msra.mxu2 %v1061_v25  ;;  %1258 = vmatpush.bf16.msra.mxu3 %v1061_v25  ;;  %v419_v25 = vadd.s32 80, %v1355_v11  ;;  %v400_v29 = vmax.f32 %v368_v18, 0.0  ;;  %v467_v30 = vadd.s32 %v1367_v20, %v434_v22  ;;  %vm498_vm9 = vcmp.lt.s32.totalorder %v466_v23, 392 }
  0x22   : > { %v377_v31 = vmax.f32 %v345_v14, 0.0  ;;  %v378_v32 = vmax.f32 %v346_v15, 0.0  ;;  %v445_v33 = vadd.s32 %v1367_v20, %v412_v16  ;;  %v353_v34 = vadd.f32 %v1365_v19, %v317_v17 }
  0x23   : > { %v427_v36 = vadd.s32 144, %v1355_v11  ;;  %v428_v37 = vadd.s32 152, %v1355_v11  ;;  %vm499_vm10 = vcmp.lt.s32.totalorder %v467_v30, 392  ;;  %v1046_v38 = vpack.c.bf16 %v400_v29, %v399_v21 }
  0x24   : > { %624 = vmatpush.bf16.msra.mxu0 %v1060_v40  ;;  %1259 = vmatpush.bf16.msra.mxu1 %v1060_v40  ;;  %v354_v39 = vadd.f32 %v1365_v19, %v318_v24  ;;  %v362_v41 = vadd.f32 %v1365_v19, %v326_v27  ;;  %vm1045_vm11 = vmpackc.low %vm499_vm10, %vm498_vm9  ;;  %v452_v42 = vadd.s32 %v1367_v20, %v419_v25  ;;  %v1077_v44 = vunpack.c.l.bf16 %v1212_v35 }
  0x25   : > { %1260 = vmatpush.bf16.msra.mxu2 %v1060_v40  ;;  %1261 = vmatpush.bf16.msra.mxu3 %v1060_v40  ;;  %v361_v40 = vadd.f32 %v1365_v19, %v325_v26  ;;  %v453_v43 = vadd.s32 %v1367_v20, %v420_v28  ;;  %v1078_v45 = vunpack.c.h.bf16 %v1212_v35  ;;  %vm476_vm12 = vcmp.lt.s32.totalorder %v1398_v48, 392 }
  0x26   : > { %vm477_vm13 = vcmp.lt.s32.totalorder %v445_v33, 392  ;;  %v1013_v46 = vpack.c.bf16 %v378_v32, %v377_v31  ;;  %v385_v47 = vmax.f32 %v353_v34, 0.0  ;;  %v460_v49 = vadd.s32 %v1367_v20, %v427_v36 }
  0x27   : > { %v461_v50 = vadd.s32 %v1367_v20, %v428_v37  ;;  %v386_v53 = vmax.f32 %v354_v39, 0.0  ;;  %v393_v54 = vmax.f32 %v361_v40, 0.0  ;;  %v1121_v56 = vunpack.c.l.bf16 %v1223_v52  ;;  %vm1469_vm2 = vmpackc.low %vm477_vm13, %vm476_vm12  ;;  %v1213_v37 = vld [vmem:[%s1341_s30 + $0x18] sm:$0xff]  }
  0x28   : > { %625 = vmatpush.bf16.msra.mxu0 %v1059_v55  ;;  %1262 = vmatpush.bf16.msra.mxu1 %v1059_v55  ;;  %vm484_vm14 = vcmp.lt.s32.totalorder %v452_v42, 392  ;;  %vm485_vm15 = vcmp.lt.s32.totalorder %v453_v43, 392  ;;  %v311_v57 = vmul.f32 %v1351_v9, %v1077_v44  ;;  %v312_v58 = vmul.f32 %v1351_v9, %v1078_v45 }
  0x29   : > { %1263 = vmatpush.bf16.msra.mxu2 %v1059_v55  ;;  %1264 = vmatpush.bf16.msra.mxu3 %v1059_v55  ;;  %v394_v55 = vmax.f32 %v362_v41, 0.0  ;;  %v1094_v61 = vunpack.c.h.bf16 %v1216_v51  ;;  %v1122_v62 = vunpack.c.h.bf16 %v1223_v52  ;;  %v333_v63 = vmul.f32 %v1351_v9, %v1121_v56  ;;  %vm1024_vm3 = vmpackc.low %vm485_vm15, %vm484_vm14  ;;  %v1224_v41 = vld [vmem:[%s1341_s30 + $0x70] sm:$0xff]   ;;  %v1221_v56 = vld [vmem:[%s1341_s30 + $0x58] sm:$0xff]  }
  0x2a   : > { %v413_v0 = vadd.s32 32, %v1355_v11  ;;  %v414_v1 = vadd.s32 40, %v1355_v11  ;;  %vm492_vm0 = vcmp.lt.s32.totalorder %v460_v49, 392  ;;  %vm493_vm1 = vcmp.lt.s32.totalorder %v461_v50, 392  ;;  %v1217_v50 = vld [vmem:[%s1341_s30 + $0x38] sm:$0xff]  }
  0x2b   : > { %1011 = vmatmul.msk.bf16.vlgmr.msra.gmra.mxu0 %vm1413_vm6, %v1010_v60  ;;  %1023 = vmatmul.msk.bf16.vlgmr.msra.gmra.mxu1 %vm1419_vm7, %v1022_v3  ;;  %v1093_v60 = vunpack.c.l.bf16 %v1216_v51  ;;  %v1025_v3 = vpack.c.bf16 %v386_v53, %v385_v47  ;;  %v1037_v4 = vpack.c.bf16 %v394_v55, %v393_v54  ;;  %v1109_v5 = vunpack.c.l.bf16 %v1220_v59  ;;  %vm1036_vm4 = vmpackc.low %vm493_vm1, %vm492_vm0 }
  0x2c   : > { %1035 = vmatmul.msk.bf16.vlgmr.msra.gmra.mxu2 %vm1033_vm8, %v1034_v8  ;;  %1047 = vmatmul.msk.bf16.vlgmr.msra.gmra.mxu3 %vm1045_vm11, %v1046_v38  ;;  %v1110_v6 = vunpack.c.h.bf16 %v1220_v59  ;;  %v334_v7 = vmul.f32 %v1351_v9, %v1122_v62  ;;  %v369_v8 = vadd.f32 %v1365_v19, %v333_v63  ;;  %v435_v10 = vadd.s32 208, %v1355_v11 }
  0x2d   : > { %v436_v48 = vadd.s32 216, %v1355_v11  ;;  %v347_v12 = vadd.f32 %v1365_v19, %v311_v57  ;;  %v348_v13 = vadd.f32 %v1365_v19, %v312_v58  ;;  %v319_v14 = vmul.f32 %v1351_v9, %v1093_v60 }
  0x2e   : > { %v320_v15 = vmul.f32 %v1351_v9, %v1094_v61  ;;  %v370_v16 = vadd.f32 %v1365_v19, %v334_v7  ;;  %v401_v17 = vmax.f32 %v369_v8, 0.0  ;;  %v468_v18 = vadd.s32 %v1367_v20, %v435_v10 }
  0x2f   : > { %v469_v21 = vadd.s32 %v1367_v20, %v436_v48  ;;  %v446_v22 = vadd.s32 %v1367_v20, %v413_v0  ;;  %v421_v23 = vadd.s32 96, %v1355_v11  ;;  %v422_v24 = vadd.s32 104, %v1355_v11 }
  0x30   : > { %v327_v25 = vmul.f32 %v1351_v9, %v1109_v5  ;;  %v328_v26 = vmul.f32 %v1351_v9, %v1110_v6  ;;  %v402_v27 = vmax.f32 %v370_v16, 0.0  ;;  %vm500_vm5 = vcmp.lt.s32.totalorder %v468_v18, 392 }
  0x31   : > { %vm501_vm6 = vcmp.lt.s32.totalorder %v469_v21, 392  ;;  %v447_v28 = vadd.s32 %v1367_v20, %v414_v1  ;;  %v355_v29 = vadd.f32 %v1365_v19, %v319_v14  ;;  %v356_v30 = vadd.f32 %v1365_v19, %v320_v15 }
  0x32   : > { %v429_v31 = vadd.s32 160, %v1355_v11  ;;  %vm1048_vm7 = vmpackc.low %vm501_vm6, %vm500_vm5  ;;  %v379_v32 = vmax.f32 %v347_v12, 0.0  ;;  %v380_v33 = vmax.f32 %v348_v13, 0.0  ;;  %v430_v34 = vadd.s32 168, %v1355_v11  ;;  %v1225_v12 = vld [vmem:[%s1341_s30 + $0x78] sm:$0xff]  }
  0x33   : > { %v1049_v35 = vpack.c.bf16 %v402_v27, %v401_v17  ;;  %v454_v36 = vadd.s32 %v1367_v20, %v421_v23  ;;  %vm478_vm8 = vcmp.lt.s32.totalorder %v446_v22, 392  ;;  %v455_v38 = vadd.s32 %v1367_v20, %v422_v24 }
  0x34   : > { %v363_v39 = vadd.f32 %v1365_v19, %v327_v25  ;;  %v364_v40 = vadd.f32 %v1365_v19, %v328_v26  ;;  %vm479_vm9 = vcmp.lt.s32.totalorder %v447_v28, 392  ;;  %v387_v42 = vmax.f32 %v355_v29, 0.0 }
  0x35   : > { %v388_v43 = vmax.f32 %v356_v30, 0.0  ;;  %v462_v44 = vadd.s32 %v1367_v20, %v429_v31  ;;  %v1016_v45 = vpack.c.bf16 %v380_v33, %v379_v32  ;;  %v1082_v47 = vunpack.c.h.bf16 %v1213_v37  ;;  %vm1516_vm14 = vmpackc.low %vm479_vm9, %vm478_vm8 }
  0x36   : > { %v463_v49 = vadd.s32 %v1367_v20, %v430_v34  ;;  %vm486_vm10 = vcmp.lt.s32.totalorder %v454_v36, 392  ;;  %v1125_v51 = vunpack.c.l.bf16 %v1224_v41  ;;  %v1126_v52 = vunpack.c.h.bf16 %v1224_v41 }
  0x37   : > { %v437_v53 = vadd.s32 224, %v1355_v11  ;;  %vm487_vm11 = vcmp.lt.s32.totalorder %v455_v38, 392  ;;  %v395_v54 = vmax.f32 %v363_v39, 0.0  ;;  %v396_v55 = vmax.f32 %v364_v40, 0.0 }
  0x38   : > { %v438_v57 = vadd.s32 232, %v1355_v11  ;;  %v1028_v58 = vpack.c.bf16 %v388_v43, %v387_v42  ;;  %vm494_vm12 = vcmp.lt.s32.totalorder %v462_v44, 392  ;;  %v335_v59 = vmul.f32 %v1351_v9, %v1125_v51  ;;  %vm1027_vm15 = vmpackc.low %vm487_vm11, %vm486_vm10 }
  0x39   : > { %v336_v60 = vmul.f32 %v1351_v9, %v1126_v52  ;;  %vm495_vm13 = vcmp.lt.s32.totalorder %v463_v49, 392  ;;  %v1097_v61 = vunpack.c.l.bf16 %v1217_v50  ;;  %v470_v62 = vadd.s32 %v1367_v20, %v437_v53 }
  0x3a   : > { %v471_v63 = vadd.s32 %v1367_v20, %v438_v57  ;;  %v1098_v1 = vunpack.c.h.bf16 %v1217_v50  ;;  %v1113_v2 = vunpack.c.l.bf16 %v1221_v56  ;;  %v1040_v5 = vpack.c.bf16 %v396_v55, %v395_v54  ;;  %vm1039_vm0 = vmpackc.low %vm495_vm13, %vm494_vm12 }
  0x3b   : > { %1014 = vmatmul.msk.bf16.gmra.mxu0 %vm1469_vm2, %v1013_v46  ;;  %1026 = vmatmul.msk.bf16.gmra.mxu1 %vm1024_vm3, %v1025_v3  ;;  %v1081_v46 = vunpack.c.l.bf16 %v1213_v37  ;;  %v371_v3 = vadd.f32 %v1365_v19, %v335_v59  ;;  %v1114_v6 = vunpack.c.h.bf16 %v1221_v56  ;;  %v314_v8 = vmul.f32 %v1351_v9, %v1082_v47 }
  0x3c   : > { %1038 = vmatmul.msk.bf16.gmra.mxu2 %vm1036_vm4, %v1037_v4  ;;  %1050 = vmatmul.msk.bf16.gmra.mxu3 %vm1048_vm7, %v1049_v35  ;;  %v372_v4 = vadd.f32 %v1365_v19, %v336_v60  ;;  %v415_v13 = vadd.s32 48, %v1355_v11  ;;  %vm502_vm1 = vcmp.lt.s32.totalorder %v470_v62, 392  ;;  %vm503_vm2 = vcmp.lt.s32.totalorder %v471_v63, 392 }
  0x3d   : > { %v313_v7 = vmul.f32 %v1351_v9, %v1081_v46  ;;  %v403_v10 = vmax.f32 %v371_v3, 0.0  ;;  %v416_v14 = vadd.s32 56, %v1355_v11  ;;  %v321_v15 = vmul.f32 %v1351_v9, %v1097_v61  ;;  %vm1051_vm3 = vmpackc.low %vm503_vm2, %vm502_vm1 }
  0x3e   : > { %v404_v48 = vmax.f32 %v372_v4, 0.0  ;;  %v322_v16 = vmul.f32 %v1351_v9, %v1098_v1  ;;  %v329_v17 = vmul.f32 %v1351_v9, %v1113_v2  ;;  %v330_v18 = vmul.f32 %v1351_v9, %v1114_v6 }
  0x3f   : > { %v1129_v22 = vunpack.c.l.bf16 %v1225_v12  ;;  %v1130_v23 = vunpack.c.h.bf16 %v1225_v12  ;;  %v349_v24 = vadd.f32 %v1365_v19, %v313_v7  ;;  %v350_v25 = vadd.f32 %v1365_v19, %v314_v8 }
  0x40   : > { %v1052_v21 = vpack.c.bf16 %v404_v48, %v403_v10  ;;  %v423_v26 = vadd.s32 112, %v1355_v11  ;;  %v424_v27 = vadd.s32 120, %v1355_v11  ;;  %v431_v28 = vadd.s32 176, %v1355_v11 }
  0x41   : > { %v432_v29 = vadd.s32 184, %v1355_v11  ;;  %v448_v30 = vadd.s32 %v1367_v20, %v415_v13  ;;  %v449_v31 = vadd.s32 %v1367_v20, %v416_v14  ;;  %v357_v32 = vadd.f32 %v1365_v19, %v321_v15 }
  0x42   : > { %v358_v33 = vadd.f32 %v1365_v19, %v322_v16  ;;  %v365_v34 = vadd.f32 %v1365_v19, %v329_v17  ;;  %v366_v35 = vadd.f32 %v1365_v19, %v330_v18  ;;  %v337_v36 = vmul.f32 %v1351_v9, %v1129_v22 }
  0x43   : > { %v338_v37 = vmul.f32 %v1351_v9, %v1130_v23  ;;  %v381_v38 = vmax.f32 %v349_v24, 0.0  ;;  %v382_v39 = vmax.f32 %v350_v25, 0.0  ;;  %v456_v40 = vadd.s32 %v1367_v20, %v423_v26 }
  0x44   : > { %v457_v41 = vadd.s32 %v1367_v20, %v424_v27  ;;  %v464_v42 = vadd.s32 %v1367_v20, %v431_v28  ;;  %v465_v43 = vadd.s32 %v1367_v20, %v432_v29  ;;  %v439_v44 = vadd.s32 240, %v1355_v11 }
  0x45   : > { %vm480_vm4 = vcmp.lt.s32.totalorder %v448_v30, 392  ;;  %vm481_vm5 = vcmp.lt.s32.totalorder %v449_v31, 392  ;;  %v389_v46 = vmax.f32 %v357_v32, 0.0  ;;  %v390_v47 = vmax.f32 %v358_v33, 0.0 }
  0x46   : > { %v397_v49 = vmax.f32 %v365_v34, 0.0  ;;  %v398_v9 = vmax.f32 %v366_v35, 0.0  ;;  %v373_v50 = vadd.f32 %v1365_v19, %v337_v36  ;;  %v374_v51 = vadd.f32 %v1365_v19, %v338_v37  ;;  %vm1018_vm10 = vmpackc.low %vm481_vm5, %vm480_vm4 }
  0x47   : > { %vm488_vm6 = vcmp.lt.s32.totalorder %v456_v40, 392  ;;  %vm489_vm7 = vcmp.lt.s32.totalorder %v457_v41, 392  ;;  %vm496_vm8 = vcmp.lt.s32.totalorder %v464_v42, 392  ;;  %vm497_vm9 = vcmp.lt.s32.totalorder %v465_v43, 392 }
  0x48   : > { %v472_v52 = vadd.s32 %v1367_v20, %v439_v44  ;;  %v1031_v54 = vpack.c.bf16 %v390_v47, %v389_v46  ;;  %vm1030_vm11 = vmpackc.low %vm489_vm7, %vm488_vm6  ;;  %v1043_v55 = vpack.c.bf16 %v398_v9, %v397_v49  ;;  %v405_v56 = vmax.f32 %v373_v50, 0.0 }
  0x49   : > { %v406_v57 = vmax.f32 %v374_v51, 0.0  ;;  %vm1042_vm12 = vmpackc.low %vm497_vm9, %vm496_vm8 }
  0x4a   : > { %vm504_vm13 = vcmp.lt.s32.totalorder %v472_v52, 392 }
  0x4b   : > { %1017 = vmatmul.msk.bf16.gmra.mxu0 %vm1516_vm14, %v1016_v45  ;;  %1029 = vmatmul.msk.bf16.gmra.mxu1 %vm1027_vm15, %v1028_v58  ;;  %v440_v45 = vadd.s32 248, %v1355_v11  ;;  %v1019_v11 = vpack.c.bf16 %v382_v39, %v381_v38  ;;  %v1055_v19 = vpack.c.bf16 %v406_v57, %v405_v56 }
  0x4c   : > { %1041 = vmatmul.msk.bf16.gmra.mxu2 %vm1039_vm0, %v1040_v5  ;;  %1053 = vmatmul.msk.bf16.gmra.mxu3 %vm1051_vm3, %v1052_v21 }
  0x4d   : > { %v473_v53 = vadd.s32 %v1367_v20, %v440_v45 }
  0x4f   : > { %vm505_vm14 = vcmp.lt.s32.totalorder %v473_v53, 392 }
  0x50   : > { %vm1054_vm15 = vmpackc.low %vm505_vm14, %vm504_vm13 }
  0x5b   : > { %1020 = vmatmul.msk.bf16.gmra.mxu0 %vm1018_vm10, %v1019_v11  ;;  %1032 = vmatmul.msk.bf16.gmra.mxu1 %vm1030_vm11, %v1031_v54 }
  0x5c   : > { %1044 = vmatmul.msk.bf16.gmra.mxu2 %vm1042_vm12, %v1043_v55  ;;  %1056 = vmatmul.msk.bf16.gmra.mxu3 %vm1054_vm15, %v1055_v19 }
  0xa8   : > { %v627_v58 = vpop.f32.mrf.mxu0  ;;  %v1562_v59 = vpop.f32.mrf.mxu1 }
  0xa9   : > { %v809_v29 = vmul.f32 %v627_v58, %v627_v58 }
  0xaf   : > { %v1564_v20 = vpop.f32.mrf.mxu2  ;;  %v1578_v0 = vpop.f32.mrf.mxu3 }
  0xb0   : > { %v629_v60 = vpop.f32.mrf.mxu0  ;;  %v1573_v61 = vpop.f32.mrf.mxu1 }
  0xb1   : > { %v1134_v62 = vpack.c.bf16 %v629_v60, %v627_v58  ;;  %v1154_v63 = vpack.c.bf16 %v1573_v61, %v1562_v59  ;;  %v810_v27 = vmul.f32 %v629_v60, %v629_v60  ;;  %v771_v31 = vadd.f32 %v629_v60, %v627_v58 }
  0xb2   : > { %v817_v58 = vmul.f32 %v1562_v59, %v1562_v59 }
  0xb3   : > { %1135 = vst [vmem:[%s1571_s27] sm:$0xff] %v1134_v62   ;;  %v841_v32 = vadd.f32 %v810_v27, %v809_v29 }
  0xb4   : > { %1229 = vst [vmem:[%s1571_s27 + $0x20] sm:$0xff] %v1154_v63  }
  0xb7   : > { %v1581_v1 = vpop.f32.mrf.mxu2  ;;  %v1588_v5 = vpop.f32.mrf.mxu3 }
  0xb8   : > { %v632_v2 = vpop.f32.mrf.mxu0  ;;  %v1583_v3 = vpop.f32.mrf.mxu1  ;;  %v1174_v4 = vpack.c.bf16 %v1581_v1, %v1564_v20  ;;  %v1194_v6 = vpack.c.bf16 %v1588_v5, %v1578_v0 }
  0xb9   : > { %v811_v30 = vmul.f32 %v632_v2, %v632_v2  ;;  %v772_v34 = vadd.f32 %v771_v31, %v632_v2 }
  0xba   : > { %1233 = vst [vmem:[%s1571_s27 + $0x40] sm:$0xff] %v1174_v4  }
  0xbb   : > { %1237 = vst [vmem:[%s1571_s27 + $0x60] sm:$0xff] %v1194_v6   ;;  %v842_v36 = vadd.f32 %v841_v32, %v811_v30 }
  0xbf   : > { %v1593_v7 = vpop.f32.mrf.mxu2  ;;  %v1600_v13 = vpop.f32.mrf.mxu3 }
  0xc0   : > { %v634_v8 = vpop.f32.mrf.mxu0  ;;  %v1595_v10 = vpop.f32.mrf.mxu1 }
  0xc1   : > { %v1139_v48 = vpack.c.bf16 %v634_v8, %v632_v2  ;;  %v1159_v12 = vpack.c.bf16 %v1595_v10, %v1583_v3  ;;  %v812_v33 = vmul.f32 %v634_v8, %v634_v8  ;;  %v773_v41 = vadd.f32 %v772_v34, %v634_v8 }
  0xc2   : > { %v818_v2 = vmul.f32 %v1573_v61, %v1573_v61  ;;  %v819_v8 = vmul.f32 %v1583_v3, %v1583_v3 }
  0xc3   : > { %1226 = vst [vmem:[%s1571_s27 + $0x8] sm:$0xff] %v1139_v48   ;;  %v843_v42 = vadd.f32 %v842_v36, %v812_v33 }
  0xc4   : > { %1230 = vst [vmem:[%s1571_s27 + $0x28] sm:$0xff] %v1159_v12  }
  0xc7   : > { %v1603_v14 = vpop.f32.mrf.mxu2  ;;  %v1610_v18 = vpop.f32.mrf.mxu3 }
  0xc8   : > { %v637_v15 = vpop.f32.mrf.mxu0  ;;  %v1605_v16 = vpop.f32.mrf.mxu1  ;;  %v1179_v17 = vpack.c.bf16 %v1603_v14, %v1593_v7  ;;  %v1199_v21 = vpack.c.bf16 %v1610_v18, %v1600_v13 }
  0xc9   : > { %v813_v37 = vmul.f32 %v637_v15, %v637_v15  ;;  %v774_v44 = vadd.f32 %v773_v41, %v637_v15  ;;  %v826_v41 = vmul.f32 %v1581_v1, %v1581_v1 }
  0xca   : > { %1234 = vst [vmem:[%s1571_s27 + $0x48] sm:$0xff] %v1179_v17  }
  0xcb   : > { %1238 = vst [vmem:[%s1571_s27 + $0x68] sm:$0xff] %v1199_v21   ;;  %v844_v46 = vadd.f32 %v843_v42, %v813_v37 }
  0xcf   : > { %v1615_v22 = vpop.f32.mrf.mxu2  ;;  %v1622_v28 = vpop.f32.mrf.mxu3 }
  0xd0   : > { %v639_v23 = vpop.f32.mrf.mxu0  ;;  %v1617_v24 = vpop.f32.mrf.mxu1 }
  0xd1   : > { %v1144_v25 = vpack.c.bf16 %v639_v23, %v637_v15  ;;  %v1164_v26 = vpack.c.bf16 %v1617_v24, %v1605_v16  ;;  %v814_v43 = vmul.f32 %v639_v23, %v639_v23  ;;  %v775_v9 = vadd.f32 %v774_v44, %v639_v23 }
  0xd2   : > { %v822_v29 = vmul.f32 %v1617_v24, %v1617_v24 }
  0xd3   : > { %1227 = vst [vmem:[%s1571_s27 + $0x10] sm:$0xff] %v1144_v25   ;;  %v845_v50 = vadd.f32 %v844_v46, %v814_v43  ;;  %v827_v43 = vmul.f32 %v1593_v7, %v1593_v7  ;;  %v828_v46 = vmul.f32 %v1603_v14, %v1603_v14 }
  0xd4   : > { %1231 = vst [vmem:[%s1571_s27 + $0x30] sm:$0xff] %v1164_v26  }
  0xd7   : > { %v1625_v35 = vpop.f32.mrf.mxu2  ;;  %v1630_v45 = vpop.f32.mrf.mxu3 }
  0xd8   : > { %v642_v38 = vpop.f32.mrf.mxu0  ;;  %v662_v39 = vpop.f32.mrf.mxu1  ;;  %v1184_v40 = vpack.c.bf16 %v1625_v35, %v1615_v22  ;;  %v1204_v49 = vpack.c.bf16 %v1630_v45, %v1622_v28 }
  0xd9   : > { %v815_v47 = vmul.f32 %v642_v38, %v642_v38  ;;  %v776_v51 = vadd.f32 %v775_v9, %v642_v38  ;;  %v823_v33 = vmul.f32 %v662_v39, %v662_v39 }
  0xda   : > { %1235 = vst [vmem:[%s1571_s27 + $0x50] sm:$0xff] %v1184_v40  }
  0xdb   : > { %1239 = vst [vmem:[%s1571_s27 + $0x70] sm:$0xff] %v1204_v49   ;;  %v846_v53 = vadd.f32 %v845_v50, %v815_v47 }
  0xdf   : > { %v682_v52 = vpop.f32.mrf.mxu2  ;;  %v1639_v63 = vpop.f32.mrf.mxu3 }
  0xe0   : > { %v644_v11 = vpop.f32.mrf.mxu0  ;;  %v664_v54 = vpop.f32.mrf.mxu1 }
  0xe1   : > { %v1149_v55 = vpack.c.bf16 %v644_v11, %v642_v38  ;;  %v777_v56 = vadd.f32 %v776_v51, %v644_v11  ;;  %v816_v57 = vmul.f32 %v644_v11, %v644_v11  ;;  %v1169_v19 = vpack.c.bf16 %v664_v54, %v662_v39 }
  0xe2   : > { %v824_v37 = vmul.f32 %v664_v54, %v664_v54  ;;  %v830_v51 = vmul.f32 %v1625_v35, %v1625_v35 }
  0xe3   : > { %1228 = vst [vmem:[%s1571_s27 + $0x18] sm:$0xff] %v1149_v55   ;;  %v778_v60 = vadd.f32 %v777_v56, %v1562_v59  ;;  %v847_v62 = vadd.f32 %v846_v53, %v816_v57  ;;  %v820_v59 = vmul.f32 %v1595_v10, %v1595_v10 }
  0xe4   : > { %1232 = vst [vmem:[%s1571_s27 + $0x38] sm:$0xff] %v1169_v19  }
  0xe5   : > { %v779_v4 = vadd.f32 %v778_v60, %v1573_v61  ;;  %v848_v6 = vadd.f32 %v847_v62, %v817_v58  ;;  %v821_v61 = vmul.f32 %v1605_v16, %v1605_v16 }
  0xe7   : > { %v780_v48 = vadd.f32 %v779_v4, %v1583_v3  ;;  %v849_v12 = vadd.f32 %v848_v6, %v818_v2  ;;  %v684_v15 = vpop.f32.mrf.mxu2  ;;  %v704_v27 = vpop.f32.mrf.mxu3  ;;  %v836_v4 = vmul.f32 %v1610_v18, %v1610_v18 }
  0xe8   : > { %v1189_v17 = vpack.c.bf16 %v684_v15, %v682_v52  ;;  %v1209_v3 = vpack.c.bf16 %v704_v27, %v1639_v63  ;;  %v832_v57 = vmul.f32 %v684_v15, %v684_v15 }
  0xe9   : > { %v850_v21 = vadd.f32 %v849_v12, %v819_v8  ;;  %v781_v23 = vadd.f32 %v780_v48, %v1595_v10  ;;  %v837_v8 = vmul.f32 %v1622_v28, %v1622_v28 }
  0xea   : > { %1236 = vst [vmem:[%s1571_s27 + $0x58] sm:$0xff] %v1189_v17  }
  0xeb   : > { %v782_v25 = vadd.f32 %v781_v23, %v1605_v16  ;;  %v851_v26 = vadd.f32 %v850_v21, %v820_v59  ;;  %1240 = vst [vmem:[%s1571_s27 + $0x78] sm:$0xff] %v1209_v3   ;;  %v825_v16 = vmul.f32 %v1564_v20, %v1564_v20  ;;  %v839_v21 = vmul.f32 %v1639_v63, %v1639_v63 }
  0xed   : > { %v783_v30 = vadd.f32 %v782_v25, %v1617_v24  ;;  %v852_v31 = vadd.f32 %v851_v26, %v821_v61  ;;  %v840_v61 = vmul.f32 %v704_v27, %v704_v27 }
  0xef   : > { %v784_v32 = vadd.f32 %v783_v30, %v662_v39  ;;  %v853_v10 = vadd.f32 %v852_v31, %v822_v29 }
  0xf1   : > { %v854_v34 = vadd.f32 %v853_v10, %v823_v33  ;;  %v785_v36 = vadd.f32 %v784_v32, %v664_v54  ;;  %v831_v54 = vmul.f32 %v682_v52, %v682_v52 }
  0xf3   : > { %v786_v38 = vadd.f32 %v785_v36, %v1564_v20  ;;  %v855_v40 = vadd.f32 %v854_v34, %v824_v37  ;;  %v829_v20 = vmul.f32 %v1615_v22, %v1615_v22 }
  0xf5   : > { %v787_v42 = vadd.f32 %v786_v38, %v1581_v1  ;;  %v856_v24 = vadd.f32 %v855_v40, %v825_v16 }
  0xf7   : > { %v788_v39 = vadd.f32 %v787_v42, %v1593_v7  ;;  %v857_v44 = vadd.f32 %v856_v24, %v826_v41 }
  0xf9   : > { %v858_v47 = vadd.f32 %v857_v44, %v827_v43  ;;  %v789_v49 = vadd.f32 %v788_v39, %v1603_v14  ;;  %v833_v14 = vmul.f32 %v1578_v0, %v1578_v0 }
  0xfb   : > { %v790_v9 = vadd.f32 %v789_v49, %v1615_v22  ;;  %v859_v50 = vadd.f32 %v858_v47, %v828_v46  ;;  %v834_v22 = vmul.f32 %v1588_v5, %v1588_v5 }
  0xfd   : > { %v791_v1 = vadd.f32 %v790_v9, %v1625_v35  ;;  %v860_v53 = vadd.f32 %v859_v50, %v829_v20  ;;  %v835_v35 = vmul.f32 %v1600_v13, %v1600_v13 }
  0xff   : > { %v861_v7 = vadd.f32 %v860_v53, %v830_v51  ;;  %v792_v11 = vadd.f32 %v791_v1, %v682_v52 }
 0x101   : > { %v862_v55 = vadd.f32 %v861_v7, %v831_v54  ;;  %v793_v56 = vadd.f32 %v792_v11, %v684_v15  ;;  %v838_v15 = vmul.f32 %v1630_v45, %v1630_v45 }
 0x103   : > { %v794_v19 = vadd.f32 %v793_v56, %v1578_v0  ;;  %v863_v58 = vadd.f32 %v862_v55, %v832_v57 }
 0x105   : > { %v795_v60 = vadd.f32 %v794_v19, %v1588_v5  ;;  %v864_v62 = vadd.f32 %v863_v58, %v833_v14 }
 0x107   : > { %v796_v52 = vadd.f32 %v795_v60, %v1600_v13  ;;  %v865_v2 = vadd.f32 %v864_v62, %v834_v22 }
 0x109   : > { %v866_v6 = vadd.f32 %v865_v2, %v835_v35  ;;  %v797_v0 = vadd.f32 %v796_v52, %v1610_v18 }
 0x10b   : > { %v798_v5 = vadd.f32 %v797_v0, %v1622_v28  ;;  %v867_v48 = vadd.f32 %v866_v6, %v836_v4 }
 0x10d   : > { %v799_v12 = vadd.f32 %v798_v5, %v1630_v45  ;;  %v868_v13 = vadd.f32 %v867_v48, %v837_v8 }
 0x10f   : > { %v869_v17 = vadd.f32 %v868_v13, %v838_v15  ;;  %v800_v59 = vadd.f32 %v799_v12, %v1639_v63 }
 0x111   : > { %v870_v18 = vadd.f32 %v869_v17, %v839_v21  ;;  %v801_v23 = vadd.f32 %v800_v59, %v704_v27 }
 0x113   : > { %v802_v25 = vrot.slane %v801_v23, 4  ;;  %v871_v26 = vadd.f32 %v870_v18, %v840_v61 }
 0x115   : > { %v803_v28 = vadd.f32 %v802_v25, %v801_v23  ;;  %v872_v3 = vrot.slane %v871_v26, 4 }
 0x117   : > { %v804_v29 = vrot.slane %v803_v28, 2  ;;  %v873_v30 = vadd.f32 %v872_v3, %v871_v26 }
 0x119   : > { %v805_v45 = vadd.f32 %v804_v29, %v803_v28  ;;  %v874_v31 = vrot.slane %v873_v30, 2 }
 0x11b   : > { %v806_v32 = vrot.slane %v805_v45, 1  ;;  %v875_v33 = vadd.f32 %v874_v31, %v873_v30 }
 0x11d   : > { %v807_v63 = vadd.f32 %v806_v32, %v805_v45  ;;  %v876_v10 = vrot.slane %v875_v33, 1 }
 0x11f   : > { %808 = vst [vmem:[%s238_s29] sm:$0x1] %v807_v63  ;;  %v877_v27 = vadd.f32 %v876_v10, %v875_v33 }
 0x121   : > { %878 = vst [vmem:[%s238_s29 + $0x1] sm:$0x1] %v877_v27 }
 0x122 PF: > { %s16_s18 = sadd.s32 1, %s1281_s18  }
 0x123   : > { %p13_p5 = scmp.ge.s32.totalorder %s16_s18, 4  }
 0x125   :  { %15 = sbr.rel (!%p13_p5) target bundleno = 1 (0x1), region = 78 }

</bundles_post_ra>
